<compile_context>
chip_gen: v7x
topology: tpu7x:2x2x1
jax: 0.10.0
libtpu: 0.0.40
codegen_flags: <defaults>
</compile_context>

<pallas_src>
import functools

import jax
import jax.numpy as jnp
from jax.experimental import pallas as pl
from jax.experimental.pallas import tpu as pltpu


_TILE_M = 1024                    # cap on M-tile rows (VMEM stays a few MiB per step)
_VMEM_LIMIT = 32 * 1024 * 1024    # safe on v5e/v6e (128 MiB) and v7x (64 MiB)


def _round_up(x, m):
    return ((x + m - 1) // m) * m


def _choose_tile_m(M):
    """Largest tile (multiple of 16, <= _TILE_M) dividing round_up(M, 16) while
    keeping grid >= 2 (both v7x TensorCores busy) and pad rows minimal."""
    Mr = _round_up(M, 16)
    if Mr < 32:
        return Mr, Mr
    limit = min(_TILE_M, (Mr // 2) // 16 * 16)
    t = limit
    while Mr % t != 0:
        t -= 16
    return t, Mr


# ----------------------------------------------------------------------------
# Pallas kernels
# ----------------------------------------------------------------------------
def _fused_matmul_kernel(p_ref, w_ref, sh_ref, o_ref, *, act):
    """y = act( (patches_bf16 @ W_bf16)_f32 + shift ); bias + eval-BN folded into W/shift."""
    y = jnp.dot(p_ref[...], w_ref[...], preferred_element_type=jnp.float32)
    y = y + sh_ref[...]                                    # folded bias+BN shift, (1, Np) f32
    if act == "leaky":
        y = jnp.maximum(y, 0.2 * y)                        # leaky ReLU (slope 0.2)
    elif act == "sigmoid":
        y = jax.nn.sigmoid(y)                              # EUP path
    o_ref[...] = y.astype(o_ref.dtype)                     # bf16 for conv-feeding layers


def _conv_vq_kernel(p_ref, w_ref, sh_ref, e_ref, q_ref, idx_ref, sse_ref, *, num_codes):
    """enc3 conv (matmul + bias) fused with the vector quantizer.

    Emits quantized vectors q (lane-dense, D padded to 128), first-min argmin
    indices and per-row sum of squared error (q - z)^2 for the commitment loss.
    """
    z = jnp.dot(p_ref[...], w_ref[...], preferred_element_type=jnp.float32)
    z = z + sh_ref[...]                                    # (tile_m, 128) f32; padded cols are 0
    e = e_ref[...]                                         # (Kep, 128) f32; padded rows/cols are 0
    Mt = z.shape[0]
    Kep = e.shape[0]
    # ||z||^2 + ||e||^2 - 2 z e^T  (padded columns contribute exactly 0)
    d = (jnp.sum(z * z, axis=1, keepdims=True)
         + jnp.sum(e * e, axis=1)[None, :]
         - 2.0 * jnp.dot(z, e.T, preferred_element_type=jnp.float32))    # (Mt, Kep)
    col = jax.lax.broadcasted_iota(jnp.int32, (Mt, Kep), 1)
    if Kep > num_codes:                                    # mask padded codewords
        d = jnp.where(col < num_codes, d, jnp.float32(jnp.inf))
    dmin = jnp.min(d, axis=1, keepdims=True)
    # first index achieving the minimum (matches torch.argmin behaviour)
    idx = jnp.min(jnp.where(d <= dmin, col, Kep), axis=1)                 # (Mt,)
    onehot = (col == idx[:, None]).astype(jnp.float32)                    # (Mt, Kep)
    q = jnp.dot(onehot, e, preferred_element_type=jnp.float32)            # (Mt, 128)
    q_ref[...] = q
    idx_ref[...] = idx[:, None].astype(jnp.int32)
    sse_ref[...] = jnp.sum((q - z) ** 2, axis=1, keepdims=True)           # pad cols contribute 0


# ----------------------------------------------------------------------------
# Pallas wrappers
# ----------------------------------------------------------------------------
def _compiler_params():
    return pltpu.CompilerParams(dimension_semantics=("parallel",),
                                vmem_limit_bytes=_VMEM_LIMIT)


def fused_matmul(patches, w, shift, act, out_dtype):
    """patches (M,K) bf16 @ w (K,N) -> act(.. + shift) with lane-dense padded output."""
    M, K = patches.shape
    N = w.shape[1]
    tile_m, Mp = _choose_tile_m(M)
    Kp = _round_up(K, 16)
    Np = _round_up(N, 128)                                 # lane-dense output store

    p = patches if (Mp == M and Kp == K) else jnp.pad(patches, ((0, Mp - M), (0, Kp - K)))
    wp = jnp.pad(w.astype(jnp.bfloat16), ((0, Kp - K), (0, Np - N)))
    sp = jnp.pad(shift.reshape(1, N).astype(jnp.float32), ((0, 0), (0, Np - N)))

    cost = pl.CostEstimate(
        flops=2 * Mp * Kp * Np,
        transcendentals=(Mp * Np if act == "sigmoid" else 0),
        bytes_accessed=Mp * Kp * 2 + Kp * Np * 2 + Mp * Np * jnp.dtype(out_dtype).itemsize)

    kern = functools.partial(_fused_matmul_kernel, act=act)
    out = pl.pallas_call(
        kern,
        out_shape=jax.ShapeDtypeStruct((Mp, Np), out_dtype),
        grid=(Mp // tile_m,),
        in_specs=[pl.BlockSpec((tile_m, Kp), lambda i: (i, 0)),
                  pl.BlockSpec((Kp, Np), lambda i: (0, 0)),
                  pl.BlockSpec((1, Np), lambda i: (0, 0))],
        out_specs=pl.BlockSpec((tile_m, Np), lambda i: (i, 0)),
        compiler_params=_compiler_params(),
        cost_estimate=cost,
    )(p, wp, sp)
    return out[:M, :N]


def conv_vq(x_nhwc, w, b, emb, commitment_cost):
    """enc3 (3x3, stride 1, pad 1) conv fused with the vector quantizer."""
    patches, (B, Ho, Wo) = im2col(x_nhwc, 3, 3, 1, (1, 1), (1, 1))
    wm = conv2d_w_to_mat(w)                                # (K, D)
    M, K = patches.shape
    D = wm.shape[1]
    Ke = emb.shape[0]
    tile_m, Mp = _choose_tile_m(M)
    Np = 128                                               # embedding_dim padded lane-dense
    Kep = _round_up(Ke, 8)

    p = patches if Mp == M else jnp.pad(patches, ((0, Mp - M), (0, 0)))
    wp = jnp.pad(wm.astype(jnp.bfloat16), ((0, 0), (0, Np - D)))
    sp = jnp.pad(b.reshape(1, D).astype(jnp.float32), ((0, 0), (0, Np - D)))
    ep = jnp.pad(emb.astype(jnp.float32), ((0, Kep - Ke), (0, Np - D)))

    kern = functools.partial(_conv_vq_kernel, num_codes=Ke)
    q, idx, sse = pl.pallas_call(
        kern,
        out_shape=(jax.ShapeDtypeStruct((Mp, Np), jnp.float32),
                   jax.ShapeDtypeStruct((Mp, 1), jnp.int32),
                   jax.ShapeDtypeStruct((Mp, 1), jnp.float32)),
        grid=(Mp // tile_m,),
        in_specs=[pl.BlockSpec((tile_m, K), lambda i: (i, 0)),
                  pl.BlockSpec((K, Np), lambda i: (0, 0)),
                  pl.BlockSpec((1, Np), lambda i: (0, 0)),
                  pl.BlockSpec((Kep, Np), lambda i: (0, 0))],
        out_specs=(pl.BlockSpec((tile_m, Np), lambda i: (i, 0)),
                   pl.BlockSpec((tile_m, 1), lambda i: (i, 0)),
                   pl.BlockSpec((tile_m, 1), lambda i: (i, 0))),
        compiler_params=_compiler_params(),
    )(p, wp, sp, ep)

    z_q = q[:M, :D].reshape(B, Ho, Wo, D)
    indices = idx[:M, 0].reshape(B, Ho, Wo)
    # commitment loss = commitment_cost * mse(quantized.detach(), inputs)
    loss = commitment_cost * jnp.sum(sse[:M, 0]) / (M * D)
    return z_q, indices, loss


# ----------------------------------------------------------------------------
# JAX glue: bf16-first im2col, weight layout, sub-pixel ConvTranspose
# ----------------------------------------------------------------------------
def im2col(x_nhwc, kh, kw, stride, pad_h, pad_w):
    # Cast to bf16 *before* building patches: halves im2col HBM traffic; the
    # MXU consumes bf16 directly with f32 accumulation inside the kernel.
    x = x_nhwc.astype(jnp.bfloat16)
    x = jnp.pad(x, ((0, 0), pad_h, pad_w, (0, 0)))
    B, H, W, C = x.shape
    Ho = (H - kh) // stride + 1
    Wo = (W - kw) // stride + 1
    cols = []
    for i in range(kh):
        for j in range(kw):
            cols.append(x[:, i:i + stride * (Ho - 1) + 1:stride,
                             j:j + stride * (Wo - 1) + 1:stride, :])
    patches = jnp.concatenate(cols, axis=-1)               # (B, Ho, Wo, kh*kw*C) bf16
    return patches.reshape(B * Ho * Wo, kh * kw * C), (B, Ho, Wo)


def conv2d_w_to_mat(w):
    # PyTorch Conv2d weight (Cout, Cin, kh, kw) -> (kh*kw*Cin, Cout), matching im2col order
    co, ci, kh, kw = w.shape
    return jnp.transpose(w, (2, 3, 1, 0)).reshape(kh * kw * ci, co)


def _convT_phase_matrices(w):
    """Decompose a ConvTranspose2d(k=4, s=2, p=1) weight (Cin, Cout, 4, 4) into the
    four sub-pixel-phase stride-1 2x2 conv matrices.  Output pixel (2m+ph, 2n+pq)
    only depends on a 2x2 input window, so the ~75%-zero dilated patch matrix is
    never built or multiplied."""
    mats = {}
    for ph in (0, 1):
        for pq in (0, 1):
            # phase 0 uses kernel taps (3, 1); phase 1 uses taps (2, 0)
            taps = w[:, :, (3 - ph)::-2, (3 - pq)::-2]      # (Cin, Cout, 2, 2)
            w_conv = jnp.transpose(taps, (1, 0, 2, 3))      # (Cout, Cin, 2, 2)
            mats[(ph, pq)] = conv2d_w_to_mat(w_conv)        # (4*Cin, Cout)
    return mats


def _fold_bias_bn(wm, b, bn):
    """Fold conv bias + eval-mode BN into the weight matrix and one shift vector."""
    n = wm.shape[1]
    if bn is None:
        scale = jnp.ones((n,), jnp.float32)
        shift_bn = jnp.zeros((n,), jnp.float32)
    else:
        gamma, beta, mean, var, eps = bn
        scale = gamma / jnp.sqrt(var + eps)
        shift_bn = beta - mean * scale
    return wm * scale[None, :], b * scale + shift_bn


def conv_bn_act(x_nhwc, w, b, bn, kh, kw, stride, pad, act, out_dtype):
    patches, (B, Ho, Wo) = im2col(x_nhwc, kh, kw, stride, (pad, pad), (pad, pad))
    wm = conv2d_w_to_mat(w)
    w_folded, shift = _fold_bias_bn(wm, b, bn)
    y = fused_matmul(patches, w_folded, shift, act, out_dtype)
    return y.reshape(B, Ho, Wo, wm.shape[1])


def convT_bn_act(x_nhwc, w, b, bn, act, out_dtype):
    """ConvTranspose2d(kernel=4, stride=2, padding=1) + folded BN + activation,
    decomposed into 4 sub-pixel phase convolutions (each 2x2, stride 1)."""
    B, H, W, _ = x_nhwc.shape
    Cout = w.shape[1]
    mats = _convT_phase_matrices(w)
    phase_out = {}
    for ph in (0, 1):
        for pq in (0, 1):
            w_folded, shift = _fold_bias_bn(mats[(ph, pq)], b, bn)
            pad_h = (1, 0) if ph == 0 else (0, 1)
            pad_w = (1, 0) if pq == 0 else (0, 1)
            patches, (_, Ho, Wo) = im2col(x_nhwc, 2, 2, 1, pad_h, pad_w)
            y = fused_matmul(patches, w_folded, shift, act, out_dtype)
            phase_out[(ph, pq)] = y.reshape(B, Ho, Wo, Cout)
    # interleave phases: out[:, 2m+ph, 2n+pq, :] = phase_out[(ph, pq)][:, m, n, :]
    row0 = jnp.stack([phase_out[(0, 0)], phase_out[(0, 1)]], axis=3)   # (B,H,W,2,C)
    row1 = jnp.stack([phase_out[(1, 0)], phase_out[(1, 1)]], axis=3)
    full = jnp.stack([row0, row1], axis=2)                             # (B,H,2,W,2,C)
    return full.reshape(B, 2 * H, 2 * W, Cout)


# ----------------------------------------------------------------------------
# Parameters (deterministic synthetic init, PyTorch-matching shapes)
# ----------------------------------------------------------------------------
def init_params(key, in_channels, embedding_dim, num_embeddings):
    ks = jax.random.split(key, 16)
    conv_w = lambda k, co, ci, kh, kw: 0.1 * jax.random.normal(k, (co, ci, kh, kw), jnp.float32)
    convT_w = lambda k, ci, co, kh, kw: 0.1 * jax.random.normal(k, (ci, co, kh, kw), jnp.float32)
    bias = lambda k, n: 0.01 * jax.random.normal(k, (n,), jnp.float32)
    # eval-mode BatchNorm at PyTorch init: gamma=1, beta=0, running_mean=0, running_var=1
    bn = lambda n: (jnp.ones((n,), jnp.float32), jnp.zeros((n,), jnp.float32),
                    jnp.zeros((n,), jnp.float32), jnp.ones((n,), jnp.float32), 1e-5)
    return {
        "enc1_w": conv_w(ks[0], 32, in_channels, 4, 4), "enc1_b": bias(ks[1], 32), "enc1_bn": bn(32),
        "enc2_w": conv_w(ks[2], 64, 32, 4, 4),          "enc2_b": bias(ks[3], 64), "enc2_bn": bn(64),
        "enc3_w": conv_w(ks[4], embedding_dim, 64, 3, 3), "enc3_b": bias(ks[5], embedding_dim),
        "emb": jax.random.uniform(ks[6], (num_embeddings, embedding_dim), jnp.float32,
                                  -1.0 / num_embeddings, 1.0 / num_embeddings),
        "dec1_w": conv_w(ks[7], 64, embedding_dim, 3, 3), "dec1_b": bias(ks[8], 64), "dec1_bn": bn(64),
        "dec2_w": convT_w(ks[9], 64, 32, 4, 4),           "dec2_b": bias(ks[10], 32), "dec2_bn": bn(32),
        "dec3_w": convT_w(ks[11], 32, in_channels, 4, 4), "dec3_b": bias(ks[12], in_channels),
    }


# ----------------------------------------------------------------------------
# Full forward pass (mirrors CIFARVQVAE.forward)
# ----------------------------------------------------------------------------
def cifar_vqvae_forward(x_nchw, params, commitment_cost=0.25):
    x = jnp.transpose(x_nchw, (0, 2, 3, 1))               # NCHW -> NHWC
    # encoder (intermediates stored bf16; they only feed the next conv)
    h = conv_bn_act(x, params["enc1_w"], params["enc1_b"], params["enc1_bn"],
                    4, 4, 2, 1, "leaky", jnp.bfloat16)
    h = conv_bn_act(h, params["enc2_w"], params["enc2_b"], params["enc2_bn"],
                    4, 4, 2, 1, "leaky", jnp.bfloat16)
    # enc3 conv fused with the vector quantizer (straight-through forward value = quantized)
    z_q, indices, vq_loss = conv_vq(h, params["enc3_w"], params["enc3_b"],
                                    params["emb"], commitment_cost)
    # decoder
    d = conv_bn_act(z_q, params["dec1_w"], params["dec1_b"], params["dec1_bn"],
                    3, 3, 1, 1, "leaky", jnp.bfloat16)
    d = convT_bn_act(d, params["dec2_w"], params["dec2_b"], params["dec2_bn"],
                     "leaky", jnp.bfloat16)
    d = convT_bn_act(d, params["dec3_w"], params["dec3_b"], None,
                     "sigmoid", jnp.float32)
    x_recon = jnp.transpose(d, (0, 3, 1, 2))               # NHWC -> NCHW
    return x_recon, vq_loss, indices


if __name__ == "__main__":
    B, C, H, W = 2, 3, 16, 16
    embedding_dim, num_embeddings, commitment_cost = 8, 16, 0.25

    key = jax.random.PRNGKey(0)
    kx, kp = jax.random.split(key)
    x = jax.random.normal(kx, (B, C, H, W), jnp.float32)
    params = init_params(kp, C, embedding_dim, num_embeddings)

    fwd = jax.jit(functools.partial(cifar_vqvae_forward, commitment_cost=commitment_cost))
    x_recon, vq_loss, indices = fwd(x, params)
    jax.block_until_ready((x_recon, vq_loss, indices))

    assert x_recon.shape == (B, C, H, W)
    assert vq_loss.shape == ()
    assert indices.shape == (B, H // 4, W // 4)
    assert bool(jnp.all(jnp.isfinite(x_recon)))
    assert bool(jnp.all((indices >= 0) & (indices < num_embeddings)))
    print("KERNEL_OK")
</pallas_src>

<mosaic_0001>
module attributes {stable_mosaic.version = 11 : i64} {
  func.func @_fused_matmul_kernel(%arg0: i32, %arg1: memref<64x48xbf16, #tpu.memory_space<vmem>>, %arg2: memref<48x128xbf16, #tpu.memory_space<vmem>>, %arg3: memref<1x128xf32, #tpu.memory_space<vmem>>, %arg4: memref<64x128xbf16, #tpu.memory_space<vmem>>) attributes {dimension_semantics = [#tpu.dimension_semantics<parallel>], iteration_bounds = array<i64: 2>, scalar_prefetch = 0 : i64, scratch_operands = 0 : i64, tpu.core_type = #tpu.core_type<tc>, window_params = [{transform_indices = @transform_0, window_bounds = array<i64: 64, 48>}, {pipeline_mode = #tpu.pipeline_mode<synchronous>, transform_indices = @transform_1, window_bounds = array<i64: 48, 128>}, {pipeline_mode = #tpu.pipeline_mode<synchronous>, transform_indices = @transform_2, window_bounds = array<i64: 1, 128>}, {transform_indices = @transform_3, window_bounds = array<i64: 64, 128>}]} {
    %c0 = arith.constant 0 : index
    %c0_0 = arith.constant 0 : index
    %0 = vector.load %arg1[%c0, %c0_0] : memref<64x48xbf16, #tpu.memory_space<vmem>>, vector<64x48xbf16>
    %c0_1 = arith.constant 0 : index
    %c0_2 = arith.constant 0 : index
    %1 = vector.load %arg2[%c0_1, %c0_2] : memref<48x128xbf16, #tpu.memory_space<vmem>>, vector<48x128xbf16>
    %cst = arith.constant dense<0.000000e+00> : vector<64x128xf32>
    %2 = tpu.matmul %0, %1, %cst {dimension_numbers = #tpu.dot_dimension_numbers<[1], [0], [0], [1], [0, 0, 1, 1], [], []>} : vector<64x48xbf16>, vector<48x128xbf16>, vector<64x128xf32> -> vector<64x128xf32>
    %c0_3 = arith.constant 0 : index
    %c0_4 = arith.constant 0 : index
    %3 = vector.load %arg3[%c0_3, %c0_4] : memref<1x128xf32, #tpu.memory_space<vmem>>, vector<1x128xf32>
    %4 = vector.broadcast %3 : vector<1x128xf32> to vector<64x128xf32>
    %5 = arith.addf %2, %4 : vector<64x128xf32>
    %cst_5 = arith.constant 2.000000e-01 : f32
    %6 = vector.broadcast %cst_5 : f32 to vector<64x128xf32>
    %7 = arith.mulf %6, %5 : vector<64x128xf32>
    %8 = arith.maximumf %5, %7 : vector<64x128xf32>
    %9 = arith.truncf %8 : vector<64x128xf32> to vector<64x128xbf16>
    %c0_6 = arith.constant 0 : index
    %c0_7 = arith.constant 0 : index
    %10 = vector.load %arg4[%c0_6, %c0_7] : memref<64x128xbf16, #tpu.memory_space<vmem>>, vector<64x128xbf16>
    tpu.vector_store %arg4[%c0_6, %c0_7], %9 {strides = array<i32>} : memref<64x128xbf16, #tpu.memory_space<vmem>>, vector<64x128xbf16>,
    return
  }
  func.func @transform_0(%arg0: i32) -> (i32, i32) {
    %c0_i32 = arith.constant 0 : i32
    %c0_i32_0 = arith.constant 0 : i32
    return %arg0, %c0_i32 : i32, i32
  }
  func.func @transform_1(%arg0: i32) -> (i32, i32) {
    %c0_i32 = arith.constant 0 : i32
    %c0_i32_0 = arith.constant 0 : i32
    %c0_i32_1 = arith.constant 0 : i32
    return %c0_i32, %c0_i32_0 : i32, i32
  }
  func.func @transform_2(%arg0: i32) -> (i32, i32) {
    %c0_i32 = arith.constant 0 : i32
    %c0_i32_0 = arith.constant 0 : i32
    %c0_i32_1 = arith.constant 0 : i32
    return %c0_i32, %c0_i32_0 : i32, i32
  }
  func.func @transform_3(%arg0: i32) -> (i32, i32) {
    %c0_i32 = arith.constant 0 : i32
    %c0_i32_0 = arith.constant 0 : i32
    return %arg0, %c0_i32 : i32, i32
  }
}

module attributes {stable_mosaic.version = 11 : i64} {
  func.func @_fused_matmul_kernel(%arg0: i32, %arg1: memref<16x512xbf16, #tpu.memory_space<vmem>>, %arg2: memref<512x128xbf16, #tpu.memory_space<vmem>>, %arg3: memref<1x128xf32, #tpu.memory_space<vmem>>, %arg4: memref<16x128xbf16, #tpu.memory_space<vmem>>) attributes {dimension_semantics = [#tpu.dimension_semantics<parallel>], iteration_bounds = array<i64: 2>, scalar_prefetch = 0 : i64, scratch_operands = 0 : i64, tpu.core_type = #tpu.core_type<tc>, window_params = [{transform_indices = @transform_0, window_bounds = array<i64: 16, 512>}, {pipeline_mode = #tpu.pipeline_mode<synchronous>, transform_indices = @transform_1, window_bounds = array<i64: 512, 128>}, {pipeline_mode = #tpu.pipeline_mode<synchronous>, transform_indices = @transform_2, window_bounds = array<i64: 1, 128>}, {transform_indices = @transform_3, window_bounds = array<i64: 16, 128>}]} {
    %c0 = arith.constant 0 : index
    %c0_0 = arith.constant 0 : index
    %0 = vector.load %arg1[%c0, %c0_0] : memref<16x512xbf16, #tpu.memory_space<vmem>>, vector<16x512xbf16>
    %c0_1 = arith.constant 0 : index
    %c0_2 = arith.constant 0 : index
    %1 = vector.load %arg2[%c0_1, %c0_2] : memref<512x128xbf16, #tpu.memory_space<vmem>>, vector<512x128xbf16>
    %cst = arith.constant dense<0.000000e+00> : vector<16x128xf32>
    %2 = tpu.matmul %0, %1, %cst {dimension_numbers = #tpu.dot_dimension_numbers<[1], [0], [0], [1], [0, 0, 1, 1], [], []>} : vector<16x512xbf16>, vector<512x128xbf16>, vector<16x128xf32> -> vector<16x128xf32>
    %c0_3 = arith.constant 0 : index
    %c0_4 = arith.constant 0 : index
    %3 = vector.load %arg3[%c0_3, %c0_4] : memref<1x128xf32, #tpu.memory_space<vmem>>, vector<1x128xf32>
    %4 = vector.broadcast %3 : vector<1x128xf32> to vector<16x128xf32>
    %5 = arith.addf %2, %4 : vector<16x128xf32>
    %cst_5 = arith.constant 2.000000e-01 : f32
    %6 = vector.broadcast %cst_5 : f32 to vector<16x128xf32>
    %7 = arith.mulf %6, %5 : vector<16x128xf32>
    %8 = arith.maximumf %5, %7 : vector<16x128xf32>
    %9 = arith.truncf %8 : vector<16x128xf32> to vector<16x128xbf16>
    %c0_6 = arith.constant 0 : index
    %c0_7 = arith.constant 0 : index
    %10 = vector.load %arg4[%c0_6, %c0_7] : memref<16x128xbf16, #tpu.memory_space<vmem>>, vector<16x128xbf16>
    tpu.vector_store %arg4[%c0_6, %c0_7], %9 {strides = array<i32>} : memref<16x128xbf16, #tpu.memory_space<vmem>>, vector<16x128xbf16>,
    return
  }
  func.func @transform_0(%arg0: i32) -> (i32, i32) {
    %c0_i32 = arith.constant 0 : i32
    %c0_i32_0 = arith.constant 0 : i32
    return %arg0, %c0_i32 : i32, i32
  }
  func.func @transform_1(%arg0: i32) -> (i32, i32) {
    %c0_i32 = arith.constant 0 : i32
    %c0_i32_0 = arith.constant 0 : i32
    %c0_i32_1 = arith.constant 0 : i32
    return %c0_i32, %c0_i32_0 : i32, i32
  }
  func.func @transform_2(%arg0: i32) -> (i32, i32) {
    %c0_i32 = arith.constant 0 : i32
    %c0_i32_0 = arith.constant 0 : i32
    %c0_i32_1 = arith.constant 0 : i32
    return %c0_i32, %c0_i32_0 : i32, i32
  }
  func.func @transform_3(%arg0: i32) -> (i32, i32) {
    %c0_i32 = arith.constant 0 : i32
    %c0_i32_0 = arith.constant 0 : i32
    return %arg0, %c0_i32 : i32, i32
  }
}

module attributes {stable_mosaic.version = 11 : i64} {
  func.func @_conv_vq_kernel(%arg0: i32, %arg1: memref<16x576xbf16, #tpu.memory_space<vmem>>, %arg2: memref<576x128xbf16, #tpu.memory_space<vmem>>, %arg3: memref<1x128xf32, #tpu.memory_space<vmem>>, %arg4: memref<16x128xf32, #tpu.memory_space<vmem>>, %arg5: memref<16x128xf32, #tpu.memory_space<vmem>>, %arg6: memref<16x1xi32, #tpu.memory_space<vmem>>, %arg7: memref<16x1xf32, #tpu.memory_space<vmem>>) attributes {dimension_semantics = [#tpu.dimension_semantics<parallel>], iteration_bounds = array<i64: 2>, scalar_prefetch = 0 : i64, scratch_operands = 0 : i64, tpu.core_type = #tpu.core_type<tc>, window_params = [{transform_indices = @transform_0, window_bounds = array<i64: 16, 576>}, {pipeline_mode = #tpu.pipeline_mode<synchronous>, transform_indices = @transform_1, window_bounds = array<i64: 576, 128>}, {pipeline_mode = #tpu.pipeline_mode<synchronous>, transform_indices = @transform_2, window_bounds = array<i64: 1, 128>}, {pipeline_mode = #tpu.pipeline_mode<synchronous>, transform_indices = @transform_3, window_bounds = array<i64: 16, 128>}, {transform_indices = @transform_4, window_bounds = array<i64: 16, 128>}, {transform_indices = @transform_5, window_bounds = array<i64: 16, 1>}, {transform_indices = @transform_6, window_bounds = array<i64: 16, 1>}]} {
    %c0 = arith.constant 0 : index
    %c0_0 = arith.constant 0 : index
    %0 = vector.load %arg1[%c0, %c0_0] : memref<16x576xbf16, #tpu.memory_space<vmem>>, vector<16x576xbf16>
    %c0_1 = arith.constant 0 : index
    %c0_2 = arith.constant 0 : index
    %1 = vector.load %arg2[%c0_1, %c0_2] : memref<576x128xbf16, #tpu.memory_space<vmem>>, vector<576x128xbf16>
    %cst = arith.constant dense<0.000000e+00> : vector<16x128xf32>
    %2 = tpu.matmul %0, %1, %cst {dimension_numbers = #tpu.dot_dimension_numbers<[1], [0], [0], [1], [0, 0, 1, 1], [], []>} : vector<16x576xbf16>, vector<576x128xbf16>, vector<16x128xf32> -> vector<16x128xf32>
    %c0_3 = arith.constant 0 : index
    %c0_4 = arith.constant 0 : index
    %3 = vector.load %arg3[%c0_3, %c0_4] : memref<1x128xf32, #tpu.memory_space<vmem>>, vector<1x128xf32>
    %4 = vector.broadcast %3 : vector<1x128xf32> to vector<16x128xf32>
    %5 = arith.addf %2, %4 : vector<16x128xf32>
    %c0_5 = arith.constant 0 : index
    %c0_6 = arith.constant 0 : index
    %6 = vector.load %arg4[%c0_5, %c0_6] : memref<16x128xf32, #tpu.memory_space<vmem>>, vector<16x128xf32>
    %7 = arith.mulf %5, %5 : vector<16x128xf32>
    %cst_7 = arith.constant dense<0.000000e+00> : vector<16xf32>
    %8 = vector.multi_reduction <add>, %7, %cst_7 [1] : vector<16x128xf32> to vector<16xf32>
    %9 = vector.shape_cast %8 : vector<16xf32> to vector<16x1xf32>
    %10 = arith.mulf %6, %6 : vector<16x128xf32>
    %cst_8 = arith.constant dense<0.000000e+00> : vector<16xf32>
    %11 = vector.multi_reduction <add>, %10, %cst_8 [1] : vector<16x128xf32> to vector<16xf32>
    %12 = vector.shape_cast %11 : vector<16xf32> to vector<1x16xf32>
    %13 = vector.broadcast %9 : vector<16x1xf32> to vector<16x16xf32>
    %14 = vector.broadcast %12 : vector<1x16xf32> to vector<16x16xf32>
    %15 = arith.addf %13, %14 : vector<16x16xf32>
    %16 = tpu.transpose %6, [1, 0] : vector<16x128xf32> -> vector<128x16xf32>
    %cst_9 = arith.constant dense<0.000000e+00> : vector<16x16xf32>
    %17 = tpu.matmul %5, %16, %cst_9 {dimension_numbers = #tpu.dot_dimension_numbers<[1], [0], [0], [1], [0, 0, 1, 1], [], []>} : vector<16x128xf32>, vector<128x16xf32>, vector<16x16xf32> -> vector<16x16xf32>
    %cst_10 = arith.constant 2.000000e+00 : f32
    %18 = vector.broadcast %cst_10 : f32 to vector<16x16xf32>
    %19 = arith.mulf %18, %17 : vector<16x16xf32>
    %20 = arith.subf %15, %19 : vector<16x16xf32>
    %21 = tpu.iota {dimensions = array<i32: 1>} : vector<16x16xi32>
    %cst_11 = arith.constant dense<0x7F800000> : vector<16xf32>
    %22 = vector.multi_reduction <minimumf>, %20, %cst_11 [1] : vector<16x16xf32> to vector<16xf32>
    %23 = vector.shape_cast %22 : vector<16xf32> to vector<16x1xf32>
    %24 = vector.broadcast %23 : vector<16x1xf32> to vector<16x16xf32>
    %25 = arith.cmpf ole, %20, %24 : vector<16x16xf32>
    %c16_i32 = arith.constant 16 : i32
    %26 = vector.broadcast %c16_i32 : i32 to vector<16x16xi32>
    %27 = arith.select %25, %21, %26 : vector<16x16xi1>, vector<16x16xi32>
    %cst_12 = arith.constant dense<2147483647> : vector<16xi32>
    %28 = vector.multi_reduction <minsi>, %27, %cst_12 [1] : vector<16x16xi32> to vector<16xi32>
    %29 = vector.shape_cast %28 : vector<16xi32> to vector<16x1xi32>
    %30 = vector.broadcast %29 : vector<16x1xi32> to vector<16x16xi32>
    %31 = arith.cmpi eq, %21, %30 : vector<16x16xi32>
    %32 = arith.extui %31 : vector<16x16xi1> to vector<16x16xi32>
    %33 = arith.sitofp %32 : vector<16x16xi32> to vector<16x16xf32>
    %cst_13 = arith.constant dense<0.000000e+00> : vector<16x128xf32>
    %34 = tpu.matmul %33, %6, %cst_13 {dimension_numbers = #tpu.dot_dimension_numbers<[1], [0], [0], [1], [0, 0, 1, 1], [], []>} : vector<16x16xf32>, vector<16x128xf32>, vector<16x128xf32> -> vector<16x128xf32>
    %c0_14 = arith.constant 0 : index
    %c0_15 = arith.constant 0 : index
    %35 = vector.load %arg5[%c0_14, %c0_15] : memref<16x128xf32, #tpu.memory_space<vmem>>, vector<16x128xf32>
    tpu.vector_store %arg5[%c0_14, %c0_15], %34 {strides = array<i32>} : memref<16x128xf32, #tpu.memory_space<vmem>>, vector<16x128xf32>,
    %36 = vector.shape_cast %28 : vector<16xi32> to vector<16x1xi32>
    %c0_16 = arith.constant 0 : index
    %c0_17 = arith.constant 0 : index
    %37 = vector.load %arg6[%c0_16, %c0_17] : memref<16x1xi32, #tpu.memory_space<vmem>>, vector<16x1xi32>
    tpu.vector_store %arg6[%c0_16, %c0_17], %36 {strides = array<i32>} : memref<16x1xi32, #tpu.memory_space<vmem>>, vector<16x1xi32>,
    %38 = arith.subf %34, %5 : vector<16x128xf32>
    %39 = arith.mulf %38, %38 : vector<16x128xf32>
    %cst_18 = arith.constant dense<0.000000e+00> : vector<16xf32>
    %40 = vector.multi_reduction <add>, %39, %cst_18 [1] : vector<16x128xf32> to vector<16xf32>
    %41 = vector.shape_cast %40 : vector<16xf32> to vector<16x1xf32>
    %c0_19 = arith.constant 0 : index
    %c0_20 = arith.constant 0 : index
    %42 = vector.load %arg7[%c0_19, %c0_20] : memref<16x1xf32, #tpu.memory_space<vmem>>, vector<16x1xf32>
    tpu.vector_store %arg7[%c0_19, %c0_20], %41 {strides = array<i32>} : memref<16x1xf32, #tpu.memory_space<vmem>>, vector<16x1xf32>,
    return
  }
  func.func @transform_0(%arg0: i32) -> (i32, i32) {
    %c0_i32 = arith.constant 0 : i32
    %c0_i32_0 = arith.constant 0 : i32
    return %arg0, %c0_i32 : i32, i32
  }
  func.func @transform_1(%arg0: i32) -> (i32, i32) {
    %c0_i32 = arith.constant 0 : i32
    %c0_i32_0 = arith.constant 0 : i32
    %c0_i32_1 = arith.constant 0 : i32
    return %c0_i32, %c0_i32_0 : i32, i32
  }
  func.func @transform_2(%arg0: i32) -> (i32, i32) {
    %c0_i32 = arith.constant 0 : i32
    %c0_i32_0 = arith.constant 0 : i32
    %c0_i32_1 = arith.constant 0 : i32
    return %c0_i32, %c0_i32_0 : i32, i32
  }
  func.func @transform_3(%arg0: i32) -> (i32, i32) {
    %c0_i32 = arith.constant 0 : i32
    %c0_i32_0 = arith.constant 0 : i32
    %c0_i32_1 = arith.constant 0 : i32
    return %c0_i32, %c0_i32_0 : i32, i32
  }
  func.func @transform_4(%arg0: i32) -> (i32, i32) {
    %c0_i32 = arith.constant 0 : i32
    %c0_i32_0 = arith.constant 0 : i32
    return %arg0, %c0_i32 : i32, i32
  }
  func.func @transform_5(%arg0: i32) -> (i32, i32) {
    %c0_i32 = arith.constant 0 : i32
    %c0_i32_0 = arith.constant 0 : i32
    return %arg0, %c0_i32 : i32, i32
  }
  func.func @transform_6(%arg0: i32) -> (i32, i32) {
    %c0_i32 = arith.constant 0 : i32
    %c0_i32_0 = arith.constant 0 : i32
    return %arg0, %c0_i32 : i32, i32
  }
}

module attributes {stable_mosaic.version = 11 : i64} {
  func.func @_fused_matmul_kernel(%arg0: i32, %arg1: memref<16x80xbf16, #tpu.memory_space<vmem>>, %arg2: memref<80x128xbf16, #tpu.memory_space<vmem>>, %arg3: memref<1x128xf32, #tpu.memory_space<vmem>>, %arg4: memref<16x128xbf16, #tpu.memory_space<vmem>>) attributes {dimension_semantics = [#tpu.dimension_semantics<parallel>], iteration_bounds = array<i64: 2>, scalar_prefetch = 0 : i64, scratch_operands = 0 : i64, tpu.core_type = #tpu.core_type<tc>, window_params = [{transform_indices = @transform_0, window_bounds = array<i64: 16, 80>}, {pipeline_mode = #tpu.pipeline_mode<synchronous>, transform_indices = @transform_1, window_bounds = array<i64: 80, 128>}, {pipeline_mode = #tpu.pipeline_mode<synchronous>, transform_indices = @transform_2, window_bounds = array<i64: 1, 128>}, {transform_indices = @transform_3, window_bounds = array<i64: 16, 128>}]} {
    %c0 = arith.constant 0 : index
    %c0_0 = arith.constant 0 : index
    %0 = vector.load %arg1[%c0, %c0_0] : memref<16x80xbf16, #tpu.memory_space<vmem>>, vector<16x80xbf16>
    %c0_1 = arith.constant 0 : index
    %c0_2 = arith.constant 0 : index
    %1 = vector.load %arg2[%c0_1, %c0_2] : memref<80x128xbf16, #tpu.memory_space<vmem>>, vector<80x128xbf16>
    %cst = arith.constant dense<0.000000e+00> : vector<16x128xf32>
    %2 = tpu.matmul %0, %1, %cst {dimension_numbers = #tpu.dot_dimension_numbers<[1], [0], [0], [1], [0, 0, 1, 1], [], []>} : vector<16x80xbf16>, vector<80x128xbf16>, vector<16x128xf32> -> vector<16x128xf32>
    %c0_3 = arith.constant 0 : index
    %c0_4 = arith.constant 0 : index
    %3 = vector.load %arg3[%c0_3, %c0_4] : memref<1x128xf32, #tpu.memory_space<vmem>>, vector<1x128xf32>
    %4 = vector.broadcast %3 : vector<1x128xf32> to vector<16x128xf32>
    %5 = arith.addf %2, %4 : vector<16x128xf32>
    %cst_5 = arith.constant 2.000000e-01 : f32
    %6 = vector.broadcast %cst_5 : f32 to vector<16x128xf32>
    %7 = arith.mulf %6, %5 : vector<16x128xf32>
    %8 = arith.maximumf %5, %7 : vector<16x128xf32>
    %9 = arith.truncf %8 : vector<16x128xf32> to vector<16x128xbf16>
    %c0_6 = arith.constant 0 : index
    %c0_7 = arith.constant 0 : index
    %10 = vector.load %arg4[%c0_6, %c0_7] : memref<16x128xbf16, #tpu.memory_space<vmem>>, vector<16x128xbf16>
    tpu.vector_store %arg4[%c0_6, %c0_7], %9 {strides = array<i32>} : memref<16x128xbf16, #tpu.memory_space<vmem>>, vector<16x128xbf16>,
    return
  }
  func.func @transform_0(%arg0: i32) -> (i32, i32) {
    %c0_i32 = arith.constant 0 : i32
    %c0_i32_0 = arith.constant 0 : i32
    return %arg0, %c0_i32 : i32, i32
  }
  func.func @transform_1(%arg0: i32) -> (i32, i32) {
    %c0_i32 = arith.constant 0 : i32
    %c0_i32_0 = arith.constant 0 : i32
    %c0_i32_1 = arith.constant 0 : i32
    return %c0_i32, %c0_i32_0 : i32, i32
  }
  func.func @transform_2(%arg0: i32) -> (i32, i32) {
    %c0_i32 = arith.constant 0 : i32
    %c0_i32_0 = arith.constant 0 : i32
    %c0_i32_1 = arith.constant 0 : i32
    return %c0_i32, %c0_i32_0 : i32, i32
  }
  func.func @transform_3(%arg0: i32) -> (i32, i32) {
    %c0_i32 = arith.constant 0 : i32
    %c0_i32_0 = arith.constant 0 : i32
    return %arg0, %c0_i32 : i32, i32
  }
}

module attributes {stable_mosaic.version = 11 : i64} {
  func.func @_fused_matmul_kernel(%arg0: i32, %arg1: memref<16x256xbf16, #tpu.memory_space<vmem>>, %arg2: memref<256x128xbf16, #tpu.memory_space<vmem>>, %arg3: memref<1x128xf32, #tpu.memory_space<vmem>>, %arg4: memref<16x128xbf16, #tpu.memory_space<vmem>>) attributes {dimension_semantics = [#tpu.dimension_semantics<parallel>], iteration_bounds = array<i64: 2>, scalar_prefetch = 0 : i64, scratch_operands = 0 : i64, tpu.core_type = #tpu.core_type<tc>, window_params = [{transform_indices = @transform_0, window_bounds = array<i64: 16, 256>}, {pipeline_mode = #tpu.pipeline_mode<synchronous>, transform_indices = @transform_1, window_bounds = array<i64: 256, 128>}, {pipeline_mode = #tpu.pipeline_mode<synchronous>, transform_indices = @transform_2, window_bounds = array<i64: 1, 128>}, {transform_indices = @transform_3, window_bounds = array<i64: 16, 128>}]} {
    %c0 = arith.constant 0 : index
    %c0_0 = arith.constant 0 : index
    %0 = vector.load %arg1[%c0, %c0_0] : memref<16x256xbf16, #tpu.memory_space<vmem>>, vector<16x256xbf16>
    %c0_1 = arith.constant 0 : index
    %c0_2 = arith.constant 0 : index
    %1 = vector.load %arg2[%c0_1, %c0_2] : memref<256x128xbf16, #tpu.memory_space<vmem>>, vector<256x128xbf16>
    %cst = arith.constant dense<0.000000e+00> : vector<16x128xf32>
    %2 = tpu.matmul %0, %1, %cst {dimension_numbers = #tpu.dot_dimension_numbers<[1], [0], [0], [1], [0, 0, 1, 1], [], []>} : vector<16x256xbf16>, vector<256x128xbf16>, vector<16x128xf32> -> vector<16x128xf32>
    %c0_3 = arith.constant 0 : index
    %c0_4 = arith.constant 0 : index
    %3 = vector.load %arg3[%c0_3, %c0_4] : memref<1x128xf32, #tpu.memory_space<vmem>>, vector<1x128xf32>
    %4 = vector.broadcast %3 : vector<1x128xf32> to vector<16x128xf32>
    %5 = arith.addf %2, %4 : vector<16x128xf32>
    %cst_5 = arith.constant 2.000000e-01 : f32
    %6 = vector.broadcast %cst_5 : f32 to vector<16x128xf32>
    %7 = arith.mulf %6, %5 : vector<16x128xf32>
    %8 = arith.maximumf %5, %7 : vector<16x128xf32>
    %9 = arith.truncf %8 : vector<16x128xf32> to vector<16x128xbf16>
    %c0_6 = arith.constant 0 : index
    %c0_7 = arith.constant 0 : index
    %10 = vector.load %arg4[%c0_6, %c0_7] : memref<16x128xbf16, #tpu.memory_space<vmem>>, vector<16x128xbf16>
    tpu.vector_store %arg4[%c0_6, %c0_7], %9 {strides = array<i32>} : memref<16x128xbf16, #tpu.memory_space<vmem>>, vector<16x128xbf16>,
    return
  }
  func.func @transform_0(%arg0: i32) -> (i32, i32) {
    %c0_i32 = arith.constant 0 : i32
    %c0_i32_0 = arith.constant 0 : i32
    return %arg0, %c0_i32 : i32, i32
  }
  func.func @transform_1(%arg0: i32) -> (i32, i32) {
    %c0_i32 = arith.constant 0 : i32
    %c0_i32_0 = arith.constant 0 : i32
    %c0_i32_1 = arith.constant 0 : i32
    return %c0_i32, %c0_i32_0 : i32, i32
  }
  func.func @transform_2(%arg0: i32) -> (i32, i32) {
    %c0_i32 = arith.constant 0 : i32
    %c0_i32_0 = arith.constant 0 : i32
    %c0_i32_1 = arith.constant 0 : i32
    return %c0_i32, %c0_i32_0 : i32, i32
  }
  func.func @transform_3(%arg0: i32) -> (i32, i32) {
    %c0_i32 = arith.constant 0 : i32
    %c0_i32_0 = arith.constant 0 : i32
    return %arg0, %c0_i32 : i32, i32
  }
}

module attributes {stable_mosaic.version = 11 : i64} {
  func.func @_fused_matmul_kernel(%arg0: i32, %arg1: memref<64x128xbf16, #tpu.memory_space<vmem>>, %arg2: memref<128x128xbf16, #tpu.memory_space<vmem>>, %arg3: memref<1x128xf32, #tpu.memory_space<vmem>>, %arg4: memref<64x128xf32, #tpu.memory_space<vmem>>) attributes {dimension_semantics = [#tpu.dimension_semantics<parallel>], iteration_bounds = array<i64: 2>, scalar_prefetch = 0 : i64, scratch_operands = 0 : i64, tpu.core_type = #tpu.core_type<tc>, window_params = [{transform_indices = @transform_0, window_bounds = array<i64: 64, 128>}, {pipeline_mode = #tpu.pipeline_mode<synchronous>, transform_indices = @transform_1, window_bounds = array<i64: 128, 128>}, {pipeline_mode = #tpu.pipeline_mode<synchronous>, transform_indices = @transform_2, window_bounds = array<i64: 1, 128>}, {transform_indices = @transform_3, window_bounds = array<i64: 64, 128>}]} {
    %c0 = arith.constant 0 : index
    %c0_0 = arith.constant 0 : index
    %0 = vector.load %arg1[%c0, %c0_0] : memref<64x128xbf16, #tpu.memory_space<vmem>>, vector<64x128xbf16>
    %c0_1 = arith.constant 0 : index
    %c0_2 = arith.constant 0 : index
    %1 = vector.load %arg2[%c0_1, %c0_2] : memref<128x128xbf16, #tpu.memory_space<vmem>>, vector<128x128xbf16>
    %cst = arith.constant dense<0.000000e+00> : vector<64x128xf32>
    %2 = tpu.matmul %0, %1, %cst {dimension_numbers = #tpu.dot_dimension_numbers<[1], [0], [0], [1], [0, 0, 1, 1], [], []>} : vector<64x128xbf16>, vector<128x128xbf16>, vector<64x128xf32> -> vector<64x128xf32>
    %c0_3 = arith.constant 0 : index
    %c0_4 = arith.constant 0 : index
    %3 = vector.load %arg3[%c0_3, %c0_4] : memref<1x128xf32, #tpu.memory_space<vmem>>, vector<1x128xf32>
    %4 = vector.broadcast %3 : vector<1x128xf32> to vector<64x128xf32>
    %5 = arith.addf %2, %4 : vector<64x128xf32>
    %6 = arith.negf %5 : vector<64x128xf32>
    %7 = math.exp %6 : vector<64x128xf32>
    %cst_5 = arith.constant 1.000000e+00 : f32
    %8 = vector.broadcast %cst_5 : f32 to vector<64x128xf32>
    %9 = arith.addf %8, %7 : vector<64x128xf32>
    %10 = arith.divf %8, %9 : vector<64x128xf32>
    %c0_6 = arith.constant 0 : index
    %c0_7 = arith.constant 0 : index
    %11 = vector.load %arg4[%c0_6, %c0_7] : memref<64x128xf32, #tpu.memory_space<vmem>>, vector<64x128xf32>
    tpu.vector_store %arg4[%c0_6, %c0_7], %10 {strides = array<i32>} : memref<64x128xf32, #tpu.memory_space<vmem>>, vector<64x128xf32>,
    return
  }
  func.func @transform_0(%arg0: i32) -> (i32, i32) {
    %c0_i32 = arith.constant 0 : i32
    %c0_i32_0 = arith.constant 0 : i32
    return %arg0, %c0_i32 : i32, i32
  }
  func.func @transform_1(%arg0: i32) -> (i32, i32) {
    %c0_i32 = arith.constant 0 : i32
    %c0_i32_0 = arith.constant 0 : i32
    %c0_i32_1 = arith.constant 0 : i32
    return %c0_i32, %c0_i32_0 : i32, i32
  }
  func.func @transform_2(%arg0: i32) -> (i32, i32) {
    %c0_i32 = arith.constant 0 : i32
    %c0_i32_0 = arith.constant 0 : i32
    %c0_i32_1 = arith.constant 0 : i32
    return %c0_i32, %c0_i32_0 : i32, i32
  }
  func.func @transform_3(%arg0: i32) -> (i32, i32) {
    %c0_i32 = arith.constant 0 : i32
    %c0_i32_0 = arith.constant 0 : i32
    return %arg0, %c0_i32 : i32, i32
  }
}

</mosaic_0001>

<bundles_post_ra>
// kernel: cifar_vqvae_forward.12
= control target key start
LH: loop header
LB: loop body
LE: loop exit
PB: predicated region body
PF: predicated region fallthrough
CT: control target
= control target key end

     0   :  { %s556_s12 = smov 0   ;;  %s592_s0 = inlined_call_operand.vmem [shape: bf16[128,48], index: 0, kind: input, shape index: {}]   ;;  %s593_s1 = inlined_call_operand.vmem [shape: bf16[48,128], index: 1, kind: input, shape index: {}]   ;;  %s594_s2 = inlined_call_operand.vmem [shape: f32[1,128], index: 2, kind: input, shape index: {}]   ;;  %s595_s3 = inlined_call_operand.vmem [shape: bf16[128,128], index: 3, kind: output, shape index: {}]  }
   0x1 LB: > { %s424_s13 = sadd.s32 4294967295, %s534_s12   ;;  %p428_p0 = scmp.ge.s32.totalorder %s534_s12, 1  ;;  %s534_s12 = sphi %s556_s12, %s13_s12  }
   0x2   : > { %p138_p1 = scmp.lt.s32.totalorder %s534_s12, 3 }
   0x4   : > { %p139_p2 = pnand %p428_p0, %p138_p1 }
   0x5   : > { %v521_v0 = vld [vmem:[%s593_s1] sm:$0xff] (!%p139_p2)   ;;  %s429_s16 = sshll.u32 (!%p139_p2), %s424_s13, 3  ;;  %v522_v1 = vld [vmem:[%s593_s1 + $0x8] sm:$0xff] (!%p139_p2)   ;;  %v523_v2 = vld [vmem:[%s593_s1 + $0x10] sm:$0xff] (!%p139_p2)   ;;  %vm234_vm0 = vcmask (!%p139_p2), 392192  }
   0x6   : > { %142 = sbr.rel (%p139_p2) target bundleno = 242 (0xf2), region = 32  ;;  %p163_p3 = scmp.lt.s32.totalorder (!%p139_p2), %s429_s16, 15  ;;  %493 = vmatprep.subr.bf16.mxu0 (!%p139_p2), %v521_v0  ;;  %507 = vmatprep.subr.bf16.mxu1 (!%p139_p2), %v521_v0  ;;  %v433_v7 = vld [vmem:[%s594_s2] ss:$0 sm:$0xff] (!%p139_p2) }
   0x7   : > { %494 = vmatpush3.bf16.msra.mxu0 (!%p139_p2), %v521_v0  ;;  %510 = vmatpush3.bf16.msra.mxu1 (!%p139_p2), %v521_v0 }
   0x8   : > { %495 = vmatprep.subr.bf16.mxu0 (!%p139_p2), %v522_v1  ;;  %508 = vmatprep.subr.bf16.mxu1 (!%p139_p2), %v522_v1 }
   0xb   : > { %496 = vmatpush3.bf16.msra.mxu0 (!%p139_p2), %v522_v1  ;;  %511 = vmatpush3.bf16.msra.mxu1 (!%p139_p2), %v522_v1 }
   0xc   : > { %497 = vmatprep.subr.bf16.mxu0 (!%p139_p2), %v523_v2  ;;  %509 = vmatprep.subr.bf16.mxu1 (!%p139_p2), %v523_v2 }
   0xd   : > { %s597_s16 = smov (!%p163_p3, %s429_s16), 15 }
   0xe   : > { %s430_s21 = sshll.u32 %s597_s16, 2 }
   0xf   : > { %s166_s24 = scalar_lea.vmem %s592_s0, %s430_s21  ;;  %498 = vmatpush3.bf16.msra.mxu0 %v523_v2  ;;  %512 = vmatpush3.bf16.msra.mxu1 %v523_v2  ;;  %s172_s29 = scalar_lea.vmem %s595_s3, %s430_s21 }
  0x10   : > { %v524_v3 = vld [vmem:[%s166_s24] sm:$0xff]   ;;  %v525_v4 = vld [vmem:[%s166_s24 + $0x10] sm:$0xff]   ;;  %v526_v5 = vld [vmem:[%s166_s24 + $0x8] sm:$0xff]  }
  0x11   : > { %499 = vmatprep.mubr.msk.bf16.mxu0 %vm234_vm0, %v524_v3  ;;  %503 = vmatprep.mubr.msk.bf16.mxu1 %vm234_vm0, %v525_v4  ;;  %v527_v6 = vld [vmem:[%s166_s24 + $0x18] sm:$0xff]  }
  0x12   : > { %500 = vmatmul.mubr.msk.bf16.vlgmr.msra.gmra.mrb[0].mxu0 %vm234_vm0, %v526_v5  ;;  %504 = vmatmul.mubr.msk.bf16.vlgmr.msra.gmra.mrb[0].mxu1 %vm234_vm0, %v527_v6 }
  0xe5   : > { %v501_v8 = vpop.f32.mrb[0].mxu0  ;;  %v505_v9 = vpop.f32.mrb[0].mxu1 }
  0xe6   : > { %v290_v10 = vadd.f32 %v501_v8, %v433_v7  ;;  %v306_v11 = vadd.f32 %v505_v9, %v433_v7  ;;  %v281_v12 = vpop.f32.mrb[1].mxu0  ;;  %v297_v13 = vpop.f32.mrb[1].mxu1 }
  0xe7   : > { %v282_v14 = vadd.f32 %v433_v7, %v281_v12  ;;  %v298_v15 = vadd.f32 %v433_v7, %v297_v13  ;;  %v502_v16 = vpop.f32.mrb[2].mxu0  ;;  %v506_v17 = vpop.f32.mrb[2].mxu1 }
  0xe8   : > { %v314_v18 = vmul.f32 0.2, %v290_v10  ;;  %v318_v19 = vmul.f32 0.2, %v306_v11  ;;  %v293_v20 = vadd.f32 %v502_v16, %v433_v7  ;;  %v309_v21 = vadd.f32 %v506_v17, %v433_v7  ;;  %v284_v22 = vpop.f32.mrb[3].mxu0  ;;  %v300_v23 = vpop.f32.mrb[3].mxu1 }
  0xe9   : > { %v312_v24 = vmul.f32 0.2, %v282_v14  ;;  %v316_v25 = vmul.f32 0.2, %v298_v15  ;;  %v285_v26 = vadd.f32 %v433_v7, %v284_v22  ;;  %v301_v27 = vadd.f32 %v433_v7, %v300_v23 }
  0xea   : > { %v315_v28 = vmul.f32 0.2, %v293_v20  ;;  %v319_v29 = vmul.f32 0.2, %v309_v21  ;;  %v322_v32 = vmax.f32 %v290_v10, %v314_v18  ;;  %v326_v33 = vmax.f32 %v306_v11, %v318_v19 }
  0xeb   : > { %v313_v30 = vmul.f32 0.2, %v285_v26  ;;  %v317_v31 = vmul.f32 0.2, %v301_v27  ;;  %v320_v36 = vmax.f32 %v282_v14, %v312_v24  ;;  %v324_v37 = vmax.f32 %v298_v15, %v316_v25 }
  0xec   : > { %v323_v34 = vmax.f32 %v293_v20, %v315_v28  ;;  %v327_v35 = vmax.f32 %v309_v21, %v319_v29 }
  0xed   : > { %v321_v38 = vmax.f32 %v285_v26, %v313_v30  ;;  %v325_v39 = vmax.f32 %v301_v27, %v317_v31 }
  0xee   : > { %v471_v40 = vpack.c.bf16 %v323_v34, %v322_v32  ;;  %v481_v41 = vpack.c.bf16 %v327_v35, %v326_v33 }
  0xef   : > { %v466_v42 = vpack.c.bf16 %v321_v38, %v320_v36  ;;  %v476_v43 = vpack.c.bf16 %v325_v39, %v324_v37 }
  0xf0   : > { %483 = vst [vmem:[%s172_s29 + $0x8] sm:$0xff] %v471_v40   ;;  %485 = vst [vmem:[%s172_s29 + $0x18] sm:$0xff] %v481_v41  }
  0xf1   : > { %467 = vst [vmem:[%s172_s29] sm:$0xff] %v466_v42   ;;  %484 = vst [vmem:[%s172_s29 + $0x10] sm:$0xff] %v476_v43  }
  0xf2 PF: > { %s13_s12 = sadd.s32 1, %s534_s12  }
  0xf3   : > { %p10_p4 = scmp.ge.s32.totalorder %s13_s12, 4  }
  0xf5   :  { %12 = sbr.rel (!%p10_p4) target bundleno = 1 (0x1), region = 62 }

// kernel: cifar_vqvae_forward.13
= control target key start
LH: loop header
LB: loop body
LE: loop exit
PB: predicated region body
PF: predicated region fallthrough
CT: control target
= control target key end

     0   :  { %s794_s12 = smov 0   ;;  %s916_s0 = inlined_call_operand.vmem [shape: bf16[32,512], index: 0, kind: input, shape index: {}]   ;;  %s917_s1 = inlined_call_operand.vmem [shape: bf16[512,128], index: 1, kind: input, shape index: {}]   ;;  %s918_s2 = inlined_call_operand.vmem [shape: f32[1,128], index: 2, kind: input, shape index: {}]   ;;  %s919_s3 = inlined_call_operand.vmem [shape: bf16[32,128], index: 3, kind: output, shape index: {}]  }
   0x1 LB: > { %s617_s13 = sadd.s32 4294967295, %s772_s12   ;;  %p621_p0 = scmp.ge.s32.totalorder %s772_s12, 1  ;;  %s772_s12 = sphi %s794_s12, %s13_s12  }
   0x2   : > { %p139_p1 = scmp.lt.s32.totalorder %s772_s12, 3 }
   0x4   : > { %p140_p2 = pnand %p621_p0, %p139_p1 }
   0x5   : > { %v728_v0 = vld [vmem:[%s917_s1 + $0x40] sm:$0xff] (!%p140_p2)   ;;  %v732_v4 = vld [vmem:[%s917_s1 + $0x48] sm:$0xff] (!%p140_p2)   ;;  %v736_v8 = vld [vmem:[%s917_s1 + $0x50] sm:$0xff] (!%p140_p2)   ;;  %s622_s21 = sshll.u32 (!%p140_p2), %s617_s13, 1 }
   0x6   : > { %143 = sbr.rel (%p140_p2) target bundleno = 267 (0x10b), region = 32  ;;  %v729_v1 = vld [vmem:[%s917_s1 + $0xc0] sm:$0xff] (!%p140_p2)   ;;  %676 = vmatprep.subr.bf16.mxu0 (!%p140_p2), %v728_v0  ;;  %v733_v5 = vld [vmem:[%s917_s1 + $0xc8] sm:$0xff] (!%p140_p2)   ;;  %v737_v9 = vld [vmem:[%s917_s1 + $0xd0] sm:$0xff] (!%p140_p2)   ;;  %p165_p3 = scmp.lt.s32.totalorder (!%p140_p2), %s622_s21, 3 }
   0x7   : > { %v730_v2 = vld [vmem:[%s917_s1] sm:$0xff] (!%p140_p2)   ;;  %698 = vmatprep.subr.bf16.mxu1 (!%p140_p2), %v729_v1  ;;  %v734_v6 = vld [vmem:[%s917_s1 + $0x8] sm:$0xff] (!%p140_p2)   ;;  %v738_v10 = vld [vmem:[%s917_s1 + $0x10] sm:$0xff] (!%p140_p2)  }
   0x8   : > { %v731_v3 = vld [vmem:[%s917_s1 + $0x80] sm:$0xff] (!%p140_p2)   ;;  %677 = vmatpush3.bf16.msra.mxu0 (!%p140_p2), %v730_v2  ;;  %v735_v7 = vld [vmem:[%s917_s1 + $0x88] sm:$0xff] (!%p140_p2)   ;;  %v739_v11 = vld [vmem:[%s917_s1 + $0x90] sm:$0xff] (!%p140_p2)  }
   0x9   : > { %699 = vmatpush3.bf16.msra.mxu1 (!%p140_p2), %v731_v3  ;;  %678 = vmatprep.subr.bf16.mxu0 (!%p140_p2), %v732_v4  ;;  %v740_v12 = vld [vmem:[%s917_s1 + $0x58] sm:$0xff] (!%p140_p2)   ;;  %v744_v16 = vld [vmem:[%s917_s1 + $0x60] sm:$0xff] (!%p140_p2)   ;;  %v748_v20 = vld [vmem:[%s917_s1 + $0x68] sm:$0xff] (!%p140_p2)  }
   0xa   : > { %700 = vmatprep.subr.bf16.mxu1 (!%p140_p2), %v733_v5  ;;  %v741_v13 = vld [vmem:[%s917_s1 + $0xd8] sm:$0xff] (!%p140_p2)   ;;  %v745_v17 = vld [vmem:[%s917_s1 + $0xe0] sm:$0xff] (!%p140_p2)   ;;  %v749_v21 = vld [vmem:[%s917_s1 + $0xe8] sm:$0xff] (!%p140_p2)  }
   0xb   : > { %v742_v14 = vld [vmem:[%s917_s1 + $0x18] sm:$0xff] (!%p140_p2)   ;;  %v746_v18 = vld [vmem:[%s917_s1 + $0x20] sm:$0xff] (!%p140_p2)   ;;  %v750_v22 = vld [vmem:[%s917_s1 + $0x28] sm:$0xff] (!%p140_p2)  }
   0xc   : > { %679 = vmatpush3.bf16.msra.mxu0 (!%p140_p2), %v734_v6  ;;  %v743_v15 = vld [vmem:[%s917_s1 + $0x98] sm:$0xff] (!%p140_p2)   ;;  %v747_v19 = vld [vmem:[%s917_s1 + $0xa0] sm:$0xff] (!%p140_p2)   ;;  %v751_v23 = vld [vmem:[%s917_s1 + $0xa8] sm:$0xff] (!%p140_p2)  }
   0xd   : > { %701 = vmatpush3.bf16.msra.mxu1 %v735_v7  ;;  %680 = vmatprep.subr.bf16.mxu0 %v736_v8  ;;  %s921_s21 = smov (!%p165_p3, %s622_s21), 3  ;;  %v752_v24 = vld [vmem:[%s917_s1 + $0x70] sm:$0xff]   ;;  %v756_v28 = vld [vmem:[%s917_s1 + $0x78] sm:$0xff]   ;;  %v627_v38 = vld [vmem:[%s918_s2] ss:$0 sm:$0xff] }
   0xe   : > { %702 = vmatprep.subr.bf16.mxu1 %v737_v9  ;;  %v753_v25 = vld [vmem:[%s917_s1 + $0xf0] sm:$0xff]   ;;  %s668_s18 = sshll.u32 %s921_s21, 4  ;;  %v757_v29 = vld [vmem:[%s917_s1 + $0xf8] sm:$0xff]   ;;  %s626_s7 = sshll.u32 %s921_s21, 2 }
   0xf   : > { %v754_v26 = vld [vmem:[%s917_s1 + $0x30] sm:$0xff]   ;;  %s169_s28 = scalar_lea.vmem %s916_s0, %s668_s18  ;;  %v758_v30 = vld [vmem:[%s917_s1 + $0x38] sm:$0xff]   ;;  %s175_s10 = scalar_lea.vmem %s919_s3, %s626_s7 }
  0x10   : > { %681 = vmatpush3.bf16.msra.mxu0 %v738_v10  ;;  %v755_v27 = vld [vmem:[%s917_s1 + $0xb0] sm:$0xff]   ;;  %v759_v31 = vld [vmem:[%s917_s1 + $0xb8] sm:$0xff]  }
  0x11   : > { %703 = vmatpush3.bf16.msra.mxu1 %v739_v11  ;;  %682 = vmatprep.subr.bf16.mxu0 %v740_v12  ;;  %v760_v32 = vld [vmem:[%s169_s28] ss:$16 sps:$4 sm:$0xff]   ;;  %v762_v33 = vld [vmem:[%s169_s28 + $0x4] ss:$16 sps:$4 sm:$0xff]   ;;  %v763_v34 = vld [vmem:[%s169_s28 + $0x8] ss:$16 sps:$4 sm:$0xff]  }
  0x12   : > { %704 = vmatprep.subr.bf16.mxu1 %v741_v13  ;;  %v765_v35 = vld [vmem:[%s169_s28 + $0xc] ss:$16 sps:$4 sm:$0xff]   ;;  %497 = vmatprep.mubr.bf16.mxu0 %v762_v33 }
  0x13   : > { %538 = vmatprep.mubr.bf16.mxu1 %v765_v35 }
  0x14   : > { %683 = vmatpush3.bf16.msra.mxu0 %v742_v14 }
  0x15   : > { %705 = vmatpush3.bf16.msra.mxu1 %v743_v15  ;;  %684 = vmatprep.subr.bf16.mxu0 %v744_v16 }
  0x16   : > { %706 = vmatprep.subr.bf16.mxu1 %v745_v17 }
  0x18   : > { %685 = vmatpush3.bf16.msra.mxu0 %v746_v18 }
  0x19   : > { %707 = vmatpush3.bf16.msra.mxu1 %v747_v19  ;;  %686 = vmatprep.subr.bf16.mxu0 %v748_v20 }
  0x1a   : > { %708 = vmatprep.subr.bf16.mxu1 %v749_v21 }
  0x1c   : > { %687 = vmatpush3.bf16.msra.mxu0 %v750_v22 }
  0x1d   : > { %709 = vmatpush3.bf16.msra.mxu1 %v751_v23  ;;  %688 = vmatprep.subr.bf16.mxu0 %v752_v24 }
  0x1e   : > { %710 = vmatprep.subr.bf16.mxu1 %v753_v25 }
  0x20   : > { %689 = vmatpush3.bf16.msra.mxu0 %v754_v26 }
  0x21   : > { %711 = vmatpush3.bf16.msra.mxu1 %v755_v27  ;;  %690 = vmatprep.subr.bf16.mxu0 %v756_v28 }
  0x22   : > { %712 = vmatprep.subr.bf16.mxu1 %v757_v29 }
  0x24   : > { %691 = vmatpush3.bf16.msra.mxu0 %v758_v30 }
  0x25   : > { %713 = vmatpush3.bf16.msra.mxu1 %v759_v31 }
  0x27   : > { %498 = vmatmul.mubr.bf16.vlgmr.msra.gmra.mrb[0].mxu0 %v760_v32 }
  0x28   : > { %539 = vmatmul.mubr.bf16.vlgmr.msra.gmra.mrb[0].mxu1 %v763_v34 }
  0xfa   : > { %v692_v36 = vpop.f32.mrb[0].mxu0 }
  0xfb   : > { %v714_v37 = vpop.f32.mrb[0].mxu1  ;;  %v693_v39 = vpop.f32.mrb[1].mxu0 }
  0xfc   : > { %v694_v40 = vadd.f32 %v693_v39, %v692_v36  ;;  %v715_v41 = vpop.f32.mrb[1].mxu1  ;;  %v695_v42 = vpop.f32.mrb[2].mxu0 }
  0xfd   : > { %v716_v43 = vadd.f32 %v715_v41, %v714_v37  ;;  %v717_v44 = vpop.f32.mrb[2].mxu1  ;;  %v696_v45 = vpop.f32.mrb[3].mxu0 }
  0xfe   : > { %v500_v46 = vadd.f32 %v694_v40, %v627_v38  ;;  %v697_v47 = vadd.f32 %v696_v45, %v695_v42  ;;  %v718_v48 = vpop.f32.mrb[3].mxu1 }
  0xff   : > { %v719_v49 = vadd.f32 %v718_v48, %v717_v44 }
 0x100   : > { %v541_v50 = vadd.f32 %v716_v43, %v500_v46  ;;  %v503_v51 = vadd.f32 %v697_v47, %v627_v38 }
 0x102   : > { %v547_v52 = vmul.f32 0.2, %v541_v50  ;;  %v544_v53 = vadd.f32 %v719_v49, %v503_v51 }
 0x104   : > { %v548_v54 = vmul.f32 0.2, %v544_v53  ;;  %v549_v55 = vmax.f32 %v541_v50, %v547_v52 }
 0x106   : > { %v550_v56 = vmax.f32 %v544_v53, %v548_v54 }
 0x108   : > { %v674_v57 = vpack.c.bf16 %v550_v56, %v549_v55 }
 0x10a   : > { %675 = vst [vmem:[%s175_s10] sm:$0xff] %v674_v57  }
 0x10b PF: > { %s13_s12 = sadd.s32 1, %s772_s12  }
 0x10c   : > { %p10_p4 = scmp.ge.s32.totalorder %s13_s12, 4  }
 0x10e   :  { %12 = sbr.rel (!%p10_p4) target bundleno = 1 (0x1), region = 62 }

// kernel: cifar_vqvae_forward.15
= control target key start
LH: loop header
LB: loop body
LE: loop exit
PB: predicated region body
PF: predicated region fallthrough
CT: control target
= control target key end

     0   :  { %s438_s12 = smov 0   ;;  %s473_s0 = inlined_call_operand.vmem [shape: bf16[32,80], index: 0, kind: input, shape index: {}]   ;;  %s474_s1 = inlined_call_operand.vmem [shape: bf16[80,128], index: 1, kind: input, shape index: {}]   ;;  %s475_s2 = inlined_call_operand.vmem [shape: f32[1,128], index: 2, kind: input, shape index: {}]   ;;  %s476_s3 = inlined_call_operand.vmem [shape: bf16[32,128], index: 3, kind: output, shape index: {}]  }
   0x1 LB: > { %s344_s13 = sadd.s32 4294967295, %s414_s12   ;;  %p348_p0 = scmp.ge.s32.totalorder %s414_s12, 1  ;;  %s414_s12 = sphi %s438_s12, %s13_s12  }
   0x2   : > { %p138_p1 = scmp.lt.s32.totalorder %s414_s12, 3 }
   0x4   : > { %p139_p2 = pnand %p348_p0, %p138_p1 }
   0x5   : > { %v402_v0 = vld [vmem:[%s474_s1] sm:$0xff] (!%p139_p2)   ;;  %v416_v1 = vmov (!%p139_p2), 0.0   ;;  %v403_v2 = vld [vmem:[%s474_s1 + $0x8] sm:$0xff] (!%p139_p2)   ;;  %vm417_vm0 = vmmov (!%p139_p2), 0   ;;  %s349_s18 = sshll.u32 (!%p139_p2), %s344_s13, 1  ;;  %v404_v3 = vld [vmem:[%s474_s1 + $0x10] sm:$0xff] (!%p139_p2)  }
   0x6   : > { %142 = sbr.rel (%p139_p2) target bundleno = 249 (0xf9), region = 32  ;;  %378 = vmatprep.subr.bf16.mxu0 (!%p139_p2), %v416_v1  ;;  %388 = vmatprep.mubr.msk.bf16.mxu0 (!%p139_p2), %vm417_vm0, %v416_v1  ;;  %p163_p3 = scmp.lt.s32.totalorder (!%p139_p2), %s349_s18, 3  ;;  %v405_v4 = vld [vmem:[%s474_s1 + $0x18] sm:$0xff] (!%p139_p2)   ;;  %v406_v5 = vld [vmem:[%s474_s1 + $0x20] sm:$0xff] (!%p139_p2)   ;;  %vm229_vm1 = vcmask (!%p139_p2), 654336  }
   0x7   : > { %379 = vmatpush3.bf16.msra.mxu0 (!%p139_p2), %v402_v0  ;;  %v353_v7 = vld [vmem:[%s475_s2] ss:$0 sm:$0xff] (!%p139_p2) }
   0x8   : > { %380 = vmatprep.subr.bf16.mxu0 (!%p139_p2), %v416_v1 }
   0xb   : > { %381 = vmatpush3.bf16.msra.mxu0 (!%p139_p2), %v403_v2 }
   0xc   : > { %382 = vmatprep.subr.bf16.mxu0 (!%p139_p2), %v416_v1 }
   0xd   : > { %s478_s18 = smov (!%p163_p3, %s349_s18), 3 }
   0xe   : > { %s350_s21 = sshll.u32 %s478_s18, 2 }
   0xf   : > { %s166_s24 = scalar_lea.vmem %s473_s0, %s350_s21  ;;  %383 = vmatpush3.bf16.msra.mxu0 %v404_v3  ;;  %s172_s6 = scalar_lea.vmem %s476_s3, %s350_s21 }
  0x10   : > { %384 = vmatprep.subr.bf16.mxu0 %v416_v1  ;;  %v407_v6 = vld [vmem:[%s166_s24] sm:$0xff]  }
  0x13   : > { %385 = vmatpush3.bf16.msra.mxu0 %v405_v4 }
  0x14   : > { %386 = vmatprep.subr.bf16.mxu0 %v416_v1 }
  0x17   : > { %387 = vmatpush3.bf16.msra.mxu0 %v406_v5 }
  0x1a   : > { %389 = vmatmul.mubr.msk.bf16.vlgmr.msra.gmra.mrb[0].mxu0 %vm229_vm1, %v407_v6 }
  0xed   : > { %v267_v8 = vpop.f32.mrb[0].mxu0 }
  0xee   : > { %v268_v9 = vadd.f32 %v353_v7, %v267_v8  ;;  %v390_v10 = vpop.f32.mrb[1].mxu0 }
  0xef   : > { %v270_v11 = vpop.f32.mrb[2].mxu0 }
  0xf0   : > { %v274_v12 = vmul.f32 0.2, %v268_v9  ;;  %v271_v13 = vadd.f32 %v353_v7, %v270_v11  ;;  %v391_v14 = vpop.f32.mrb[3].mxu0 }
  0xf2   : > { %v275_v15 = vmul.f32 0.2, %v271_v13  ;;  %v276_v16 = vmax.f32 %v268_v9, %v274_v12 }
  0xf4   : > { %v277_v17 = vmax.f32 %v271_v13, %v275_v15 }
  0xf6   : > { %v370_v18 = vpack.c.bf16 %v277_v17, %v276_v16 }
  0xf8   : > { %371 = vst [vmem:[%s172_s6] sm:$0xff] %v370_v18  }
  0xf9 PF: > { %s13_s12 = sadd.s32 1, %s414_s12  }
  0xfa   : > { %p10_p4 = scmp.ge.s32.totalorder %s13_s12, 4  }
  0xfc   :  { %12 = sbr.rel (!%p10_p4) target bundleno = 1 (0x1), region = 62 }

// kernel: cifar_vqvae_forward.14
= control target key start
LH: loop header
LB: loop body
LE: loop exit
PB: predicated region body
PF: predicated region fallthrough
CT: control target
= control target key end

     0   :  { %s1381_s21 = smov 0   ;;  %s1576_s0 = inlined_call_operand.vmem [shape: bf16[32,576], index: 0, kind: input, shape index: {}]   ;;  %s1577_s1 = inlined_call_operand.vmem [shape: bf16[576,128], index: 1, kind: input, shape index: {}]   ;;  %s1578_s2 = inlined_call_operand.vmem [shape: f32[1,128], index: 2, kind: input, shape index: {}]   ;;  %s1579_s3 = inlined_call_operand.vmem [shape: f32[16,128], index: 3, kind: input, shape index: {}]   ;;  %s1580_s4 = inlined_call_operand.vmem [shape: f32[32,128], index: 4, kind: output, shape index: {0}]   ;;  %s1581_s5 = inlined_call_operand.vmem [shape: s32[32,1], index: 5, kind: output, shape index: {1}]   ;;  %s1582_s6 = inlined_call_operand.vmem [shape: f32[32,1], index: 6, kind: output, shape index: {2}]  }
   0x1 LB: > { %s1129_s22 = sadd.s32 4294967295, %s1342_s21   ;;  %p1133_p0 = scmp.ge.s32.totalorder %s1342_s21, 1  ;;  %s1342_s21 = sphi %s1381_s21, %s17_s21  }
   0x2   : > { %p219_p1 = scmp.lt.s32.totalorder %s1342_s21, 3 }
   0x4   : > { %p220_p2 = pnand %p1133_p0, %p219_p1 }
   0x5   : > { %v1293_v0 = vld [vmem:[%s1577_s1 + $0x40] sm:$0xff] (!%p220_p2)   ;;  %v1297_v4 = vld [vmem:[%s1577_s1 + $0x48] sm:$0xff] (!%p220_p2)   ;;  %v1301_v8 = vld [vmem:[%s1577_s1 + $0x50] sm:$0xff] (!%p220_p2)   ;;  %s1134_s29 = sshll.u32 (!%p220_p2), %s1129_s22, 1  ;;  %v1344_v33 = vmov (!%p220_p2), 0.0   ;;  %vm1345_vm0 = vmmov (!%p220_p2), 0  }
   0x6   : > { %223 = sbr.rel (%p220_p2) target bundleno = 1290 (0x50a), region = 36  ;;  %v1294_v1 = vld [vmem:[%s1577_s1] sm:$0xff] (!%p220_p2)   ;;  %1191 = vmatprep.subr.bf16.mxu0 (!%p220_p2), %v1293_v0  ;;  %v1298_v5 = vld [vmem:[%s1577_s1 + $0x8] sm:$0xff] (!%p220_p2)   ;;  %v1302_v9 = vld [vmem:[%s1577_s1 + $0x10] sm:$0xff] (!%p220_p2)   ;;  %p261_p3 = scmp.lt.s32.totalorder (!%p220_p2), %s1134_s29, 3  ;;  %vm612_vm1 = vcmask (!%p220_p2), 523264  }
   0x7   : > { %v1295_v2 = vld [vmem:[%s1577_s1 + $0xc0] sm:$0xff] (!%p220_p2)   ;;  %1192 = vmatpush3.bf16.msra.mxu0 (!%p220_p2), %v1294_v1  ;;  %v1299_v6 = vld [vmem:[%s1577_s1 + $0xc8] sm:$0xff] (!%p220_p2)   ;;  %v1303_v10 = vld [vmem:[%s1577_s1 + $0xd0] sm:$0xff] (!%p220_p2)   ;;  %vm766_vm2 = vcmask (!%p220_p2), 130112   ;;  %vm862_vm3 = vcmask (!%p220_p2), 130048   ;;  %vm992_vm8 = vcmask (!%p220_p2), 7168  }
   0x8   : > { %v1296_v3 = vld [vmem:[%s1577_s1 + $0x80] sm:$0xff] (!%p220_p2)   ;;  %1213 = vmatprep.subr.bf16.mxu1 (!%p220_p2), %v1295_v2  ;;  %1193 = vmatprep.subr.bf16.mxu0 (!%p220_p2), %v1297_v4  ;;  %v1300_v7 = vld [vmem:[%s1577_s1 + $0x88] sm:$0xff] (!%p220_p2)   ;;  %v1304_v11 = vld [vmem:[%s1577_s1 + $0x90] sm:$0xff] (!%p220_p2)  }
   0x9   : > { %1214 = vmatpush3.bf16.msra.mxu1 (!%p220_p2), %v1296_v3  ;;  %v1305_v12 = vld [vmem:[%s1577_s1 + $0x58] sm:$0xff] (!%p220_p2)   ;;  %v1309_v16 = vld [vmem:[%s1577_s1 + $0x60] sm:$0xff] (!%p220_p2)   ;;  %v1313_v20 = vld [vmem:[%s1577_s1 + $0x68] sm:$0xff] (!%p220_p2)  }
   0xa   : > { %1215 = vmatprep.subr.bf16.mxu1 (!%p220_p2), %v1299_v6  ;;  %v1306_v13 = vld [vmem:[%s1577_s1 + $0x18] sm:$0xff] (!%p220_p2)   ;;  %v1310_v17 = vld [vmem:[%s1577_s1 + $0x20] sm:$0xff] (!%p220_p2)   ;;  %v1314_v21 = vld [vmem:[%s1577_s1 + $0x28] sm:$0xff] (!%p220_p2)  }
   0xb   : > { %1194 = vmatpush3.bf16.msra.mxu0 (!%p220_p2), %v1298_v5  ;;  %v1307_v14 = vld [vmem:[%s1577_s1 + $0xd8] sm:$0xff] (!%p220_p2)   ;;  %v1311_v18 = vld [vmem:[%s1577_s1 + $0xe0] sm:$0xff] (!%p220_p2)   ;;  %v1315_v22 = vld [vmem:[%s1577_s1 + $0xe8] sm:$0xff] (!%p220_p2)  }
   0xc   : > { %1195 = vmatprep.subr.bf16.mxu0 (!%p220_p2), %v1301_v8  ;;  %v1308_v15 = vld [vmem:[%s1577_s1 + $0x98] sm:$0xff] (!%p220_p2)   ;;  %v1312_v19 = vld [vmem:[%s1577_s1 + $0xa0] sm:$0xff] (!%p220_p2)   ;;  %v1316_v23 = vld [vmem:[%s1577_s1 + $0xa8] sm:$0xff] (!%p220_p2)   ;;  %v755_v8 = vlaneseq (!%p220_p2) }
   0xd   : > { %1216 = vmatpush3.bf16.msra.mxu1 %v1300_v7  ;;  %s1584_s29 = smov (!%p261_p3, %s1134_s29), 3  ;;  %v1317_v24 = vld [vmem:[%s1577_s1 + $0x70] sm:$0xff]   ;;  %v1321_v28 = vld [vmem:[%s1577_s1 + $0x78] sm:$0xff]   ;;  %v1331_v37 = vld [vmem:[%s1577_s1 + $0x100] sm:$0xff]  }
   0xe   : > { %1217 = vmatprep.subr.bf16.mxu1 %v1303_v10  ;;  %s1282_s30 = smul.u32 20, %s1584_s29  ;;  %v1318_v25 = vld [vmem:[%s1577_s1 + $0x30] sm:$0xff]   ;;  %v1322_v29 = vld [vmem:[%s1577_s1 + $0x38] sm:$0xff]   ;;  %v1332_v38 = vld [vmem:[%s1577_s1 + $0x108] sm:$0xff]   ;;  %s1547_s15 = sshll.u32 %s1584_s29, 3 }
   0xf   : > { %1196 = vmatpush3.bf16.msra.mxu0 %v1302_v9  ;;  %v1319_v26 = vld [vmem:[%s1577_s1 + $0xf0] sm:$0xff]   ;;  %v1323_v30 = vld [vmem:[%s1577_s1 + $0xf8] sm:$0xff]   ;;  %v739_v42 = vld [vmem:[%s1579_s3] sm:$0xff]  ;;  %v1536_v9 = vand.u32 127, %v755_v8  ;;  %s277_s18 = scalar_lea.vmem %s1581_s5, %s1547_s15  ;;  %s271_s20 = scalar_lea.vmem %s1580_s4, %s1547_s15 }
  0x10   : > { %1197 = vmatprep.subr.bf16.mxu0 %v1305_v12  ;;  %v1320_v27 = vld [vmem:[%s1577_s1 + $0xb0] sm:$0xff]   ;;  %s1484_s16 = scalar_lea.vmem %s1576_s0, %s1282_s30  ;;  %v1327_v34 = vld [vmem:[%s1577_s1 + $0xb8] sm:$0xff]   ;;  %v740_v43 = vld [vmem:[%s1579_s3 + $0x8] sm:$0xff]  ;;  %v747_v45 = vmul.f32 %v739_v42, %v739_v42  ;;  %s283_s25 = scalar_lea.vmem %s1582_s6, %s1547_s15 }
  0x11   : > { %1218 = vmatpush3.bf16.msra.mxu1 %v1304_v11  ;;  %v1324_v31 = vld [vmem:[%s1484_s16] ss:$20 sps:$4 sm:$0xff]   ;;  %v1326_v32 = vld [vmem:[%s1484_s16 + $0x4] ss:$20 sps:$4 sm:$0xff]   ;;  %v1328_v35 = vld [vmem:[%s1484_s16 + $0x8] ss:$20 sps:$4 sm:$0xff]   ;;  %v1274_v44 = vpack.c.bf16 %v740_v43, %v739_v42  ;;  %v748_v46 = vmul.f32 %v740_v43, %v740_v43 }
  0x12   : > { %1219 = vmatprep.subr.bf16.mxu1 %v1307_v14  ;;  %648 = vmatprep.mubr.bf16.mxu0 %v1326_v32  ;;  %v1330_v36 = vld [vmem:[%s1484_s16 + $0xc] ss:$20 sps:$4 sm:$0xff]   ;;  %v1333_v39 = vld [vmem:[%s1577_s1 + $0x110] sm:$0xff]   ;;  %v1334_v40 = vld [vmem:[%s1577_s1 + $0x118] sm:$0xff]   ;;  %v758_v11 = vshrl.u32 %v755_v8, 7  ;;  %v761_v12 = vadd.s32 4294967288, %v1536_v9 }
  0x13   : > { %1198 = vmatpush3.bf16.msra.mxu0 %v1306_v13  ;;  %689 = vmatprep.mubr.bf16.mxu1 %v1330_v36  ;;  %v1335_v41 = vld [vmem:[%s1484_s16 + $0x10] ss:$20 sps:$4 sm:$0xff]   ;;  %v1142_v48 = vld [vmem:[%s1578_s2] ss:$0 sm:$0xff] }
  0x14   : > { %1199 = vmatprep.subr.bf16.mxu0 %v1309_v16  ;;  %749 = vadd.xlane.f32.xlu0 %v747_v45  ;;  %v759_v13 = vsub.s32 %v1536_v9, %v758_v11  ;;  %v764_v14 = vsub.s32 %v761_v12, %v758_v11 }
  0x15   : > { %1220 = vmatpush3.bf16.msra.mxu1 %v1308_v15 }
  0x16   : > { %1221 = vmatprep.subr.bf16.mxu1 %v1311_v18 }
  0x17   : > { %1200 = vmatpush3.bf16.msra.mxu0 %v1310_v17 }
  0x18   : > { %1201 = vmatprep.subr.bf16.mxu0 %v1313_v20  ;;  %751 = vadd.xlane.f32.xlu0 %v748_v46 }
  0x19   : > { %1222 = vmatpush3.bf16.msra.mxu1 %v1312_v19 }
  0x1a   : > { %1223 = vmatprep.subr.bf16.mxu1 %v1315_v22 }
  0x1b   : > { %1202 = vmatpush3.bf16.msra.mxu0 %v1314_v21 }
  0x1c   : > { %1203 = vmatprep.subr.bf16.mxu0 %v1317_v24 }
  0x1d   : > { %1224 = vmatpush3.bf16.msra.mxu1 %v1316_v23 }
  0x1e   : > { %1225 = vmatprep.subr.bf16.mxu1 %v1319_v26 }
  0x1f   : > { %1204 = vmatpush3.bf16.msra.mxu0 %v1318_v25 }
  0x20   : > { %1205 = vmatprep.subr.bf16.mxu0 %v1321_v28 }
  0x21   : > { %1226 = vmatpush3.bf16.msra.mxu1 %v1320_v27 }
  0x22   : > { %1227 = vmatprep.subr.bf16.mxu1 %v1323_v30 }
  0x23   : > { %1206 = vmatpush3.bf16.msra.mxu0 %v1322_v29 }
  0x24   : > { %1248 = vmatprep.subr.bf16.mxu0 %v1344_v33 }
  0x25   : > { %1228 = vmatpush3.bf16.msra.mxu1 %v1327_v34 }
  0x26   : > { %649 = vmatmul.mubr.bf16.vlgmr.msra.gmra.mrb[0].mxu0 %v1324_v31  ;;  %1275 = vmatprep.subr.bf16.mxu1 %v1274_v44 }
  0x27   : > { %1256 = vmatprep.mubr.msk.bf16.mxu0 %vm1345_vm0, %v1344_v33  ;;  %1249 = vmatpush3.bf16.msra.mxu0 %v1331_v37 }
  0x28   : > { %690 = vmatmul.mubr.bf16.vlgmr.msra.gmra.mrb[0].mxu1 %v1328_v35  ;;  %1250 = vmatprep.subr.bf16.mxu0 %v1344_v33 }
  0x2b   : > { %1251 = vmatpush3.bf16.msra.mxu0 %v1332_v38 }
  0x2c   : > { %1252 = vmatprep.subr.bf16.mxu0 %v1344_v33 }
  0x2e   : > { %1277 = vmatpush3.bf16.xpose.msra.mxu1 %v1274_v44 }
  0x2f   : > { %1253 = vmatpush3.bf16.msra.mxu0 %v1333_v39  ;;  %1279 = vmatprep.subr.bf16.mxu1 %v1274_v44 }
  0x30   : > { %1254 = vmatprep.subr.bf16.mxu0 %v1344_v33 }
  0x33   : > { %1255 = vmatpush3.bf16.msra.mxu0 %v1334_v40 }
  0x36   : > { %1257 = vmatmul.mubr.msk.bf16.vlgmr.msra.gmra.mrb[4].mxu0 %vm612_vm1, %v1335_v41 }
  0xa1   : > { %v750_v10 = vpop.xlane.xlu0 %749 }
  0xa2   : > { %v760_v17 = vrot.slane %v750_v10, %v759_v13 }
  0xa5   : > { %v752_v15 = vpop.xlane.xlu0 %751 }
  0xa6   : > { %v765_v18 = vrot.slane %v752_v15, %v764_v14 }
  0xa8   : > { %v767_v20 = vsel %vm766_vm2, %v765_v18, %v760_v17 }
  0xf9   : > { %v1207_v47 = vpop.f32.mrb[0].mxu0 }
  0xfa   : > { %v1208_v49 = vpop.f32.mrb[1].mxu0 }
  0xfb   : > { %v1209_v50 = vadd.f32 %v1208_v49, %v1207_v47  ;;  %v1210_v51 = vpop.f32.mrb[2].mxu0  ;;  %v1229_v52 = vpop.f32.mrb[0].mxu1 }
  0xfc   : > { %v1211_v53 = vpop.f32.mrb[3].mxu0  ;;  %v1230_v56 = vpop.f32.mrb[1].mxu1 }
  0xfd   : > { %v651_v54 = vadd.f32 %v1209_v50, %v1142_v48  ;;  %v1212_v55 = vadd.f32 %v1211_v53, %v1210_v51  ;;  %v1231_v57 = vadd.f32 %v1230_v56, %v1229_v52  ;;  %v1232_v58 = vpop.f32.mrb[2].mxu1 }
  0xfe   : > { %v1233_v60 = vpop.f32.mrb[3].mxu1 }
  0xff   : > { %v654_v59 = vadd.f32 %v1212_v55, %v1142_v48  ;;  %v1234_v61 = vadd.f32 %v1233_v60, %v1232_v58  ;;  %v692_v62 = vadd.f32 %v1231_v57, %v651_v54 }
 0x101   : > { %v695_v63 = vadd.f32 %v1234_v61, %v654_v59 }
 0x109   : > { %v732_v0 = vpop.f32.mrb[4].mxu0 }
 0x10a   : > { %v1526_v1 = vadd.f32 %v732_v0, %v692_v62  ;;  %v1258_v2 = vpop.f32.mrb[5].mxu0 }
 0x10b   : > { %v735_v3 = vpop.f32.mrb[6].mxu0 }
 0x10c   : > { %v1528_v4 = vadd.f32 %v735_v3, %v695_v63  ;;  %v1259_v5 = vpop.f32.mrb[7].mxu0  ;;  %1264 = vmatprep.mubr.f32.mxu1 %v1526_v1  ;;  %v741_v6 = vmul.f32 %v1526_v1, %v1526_v1 }
 0x10e   : > { %1265 = vmatmul.mubr.f32.vlgmr.msra.gmra.mrb[4].mxu1 %v1528_v4  ;;  %743 = vadd.xlane.f32.xlu1 %v741_v6  ;;  %v742_v7 = vmul.f32 %v1528_v4, %v1528_v4 }
 0x10f   : > { %1281 = vmatpush3.bf16.msra.mxu1 %v1274_v44 }
 0x112   : > { %745 = vadd.xlane.f32.xlu1 %v742_v7 }
 0x19b   : > { %v744_v16 = vpop.xlane.xlu1 %743 }
 0x19c   : > { %v781_v25 = vadd.f32 %v767_v20, %v744_v16 }
 0x19f   : > { %v746_v19 = vpop.xlane.xlu1 %745 }
 0x1a0   : > { %v782_v22 = vadd.f32 %v767_v20, %v746_v19 }
 0x1e1   : > { %v1266_v21 = vpop.f32.mrb[4].mxu1 }
 0x1e2   : > { %v859_v23 = vmul.f32 2.0, %v1266_v21  ;;  %v849_v24 = vpop.f32.mrb[5].mxu1 }
 0x1e3   : > { %v858_v26 = vmul.f32 2.0, %v849_v24 }
 0x1e4   : > { %v861_v27 = vsub.f32 %v782_v22, %v859_v23 }
 0x1e5   : > { %v860_v28 = vsub.f32 %v781_v25, %v858_v26 }
 0x1e6   : > { %v866_v29 = vsel %vm862_vm3, %v861_v27, inf }
 0x1e7   : > { %867 = vmin.xlane.f32.xlu1 %v866_v29  ;;  %v863_v30 = vsel %vm862_vm3, %v860_v28, inf }
 0x1e8   : > { %864 = vmin.xlane.f32.xlu0 %v863_v30 }
 0x274   : > { %v868_v31 = vpop.xlane.xlu1 %867 }
 0x275   : > { %vm870_vm4 = vcmp.le.f32.partialorder %v861_v27, %v868_v31  ;;  %v865_v32 = vpop.xlane.xlu0 %864 }
 0x276   : > { %v872_v34 = vsel %vm870_vm4, %v1536_v9, 16  ;;  %vm869_vm5 = vcmp.le.f32.partialorder %v860_v28, %v865_v32 }
 0x277   : > { %v888_v35 = vsel %vm862_vm3, %v872_v34, 2147483647  ;;  %v871_v36 = vsel %vm869_vm5, %v1536_v9, 16 }
 0x278   : > { %v873_v37 = vsel %vm862_vm3, %v871_v36, 2147483647  ;;  %v890_v38 = vshra.s32 %v888_v35, 16  ;;  %v889_v42 = vand.u32 65535, %v888_v35 }
 0x279   : > { %v875_v39 = vshra.s32 %v873_v37, 16  ;;  %v874_v43 = vand.u32 65535, %v873_v37 }
 0x27a   : > { %v892_v40 = vcvt.s32.f32 %v890_v38  ;;  %v891_v45 = vcvt.s32.f32 %v889_v42 }
 0x27b   : > { %v877_v41 = vcvt.s32.f32 %v875_v39  ;;  %v876_v47 = vcvt.s32.f32 %v874_v43 }
 0x27c   : > { %893 = vmin.xlane.f32.xlu1 %v892_v40 }
 0x27d   : > { %878 = vmin.xlane.f32.xlu0 %v877_v41 }
 0x309   : > { %v894_v44 = vpop.xlane.xlu1 %893 }
 0x30a   : > { %v879_v46 = vpop.xlane.xlu0 %878  ;;  %vm895_vm6 = vcmp.eq.f32.partialorder %v892_v40, %v894_v44  ;;  %v900_v50 = vcvt.f32.s32 %v894_v44 }
 0x30b   : > { %v896_v48 = vsel %vm895_vm6, %v891_v45, inf  ;;  %vm880_vm7 = vcmp.eq.f32.partialorder %v877_v41, %v879_v46  ;;  %v885_v51 = vcvt.f32.s32 %v879_v46 }
 0x30c   : > { %897 = vmin.xlane.f32.xlu1 %v896_v48  ;;  %v881_v49 = vsel %vm880_vm7, %v876_v47, inf  ;;  %v901_v53 = vshll.u32 %v900_v50, 16 }
 0x30d   : > { %882 = vmin.xlane.f32.xlu0 %v881_v49  ;;  %v886_v56 = vshll.u32 %v885_v51, 16 }
 0x399   : > { %v898_v52 = vpop.xlane.xlu1 %897 }
 0x39a   : > { %v899_v54 = vcvt.f32.s32 %v898_v52  ;;  %v883_v55 = vpop.xlane.xlu0 %882 }
 0x39b   : > { %v884_v57 = vcvt.f32.s32 %v883_v55 }
 0x39c   : > { %v902_v58 = vadd.s32 %v901_v53, %v899_v54 }
 0x39d   : > { %v887_v59 = vadd.s32 %v886_v56, %v884_v57 }
 0x39e   : > { %vm904_vm9 = vcmp.eq.s32.totalorder %v1536_v9, %v902_v58  ;;  %994 = vst.msk [vmem:[%s277_s18 + $0x8] sm:$0xff] %vm992_vm8, %v902_v58 }
 0x39f   : > { %vm903_vm10 = vcmp.eq.s32.totalorder %v1536_v9, %v887_v59  ;;  %993 = vst.msk [vmem:[%s277_s18] sm:$0xff] %vm992_vm8, %v887_v59  ;;  %v1186_v61 = vsel %vm904_vm9, 1.0, %v1344_v33 }
 0x3a0   : > { %v1185_v60 = vsel %vm903_vm10, 1.0, %v1344_v33 }
 0x3a1   : > { %1271 = vmatprep.mubr.msk.f32.mxu1 %vm862_vm3, %v1185_v60 }
 0x3a2   : > { %1272 = vmatmul.mubr.msk.f32.vlgmr.msra.gmra.mrb[6].mxu1 %vm862_vm3, %v1186_v61 }
 0x475   : > { %v1273_v62 = vpop.f32.mrb[6].mxu1 }
 0x476   : > { %v996_v63 = vsub.f32 %v1273_v62, %v1528_v4  ;;  %v981_v0 = vpop.f32.mrb[7].mxu1  ;;  %991 = vst [vmem:[%s271_s20 + $0x8] sm:$0xff] %v1273_v62 }
 0x477   : > { %990 = vst [vmem:[%s271_s20] sm:$0xff] %v981_v0  ;;  %v995_v2 = vsub.f32 %v981_v0, %v1526_v1 }
 0x478   : > { %v998_v3 = vmul.f32 %v996_v63, %v996_v63 }
 0x479   : > { %v997_v5 = vmul.f32 %v995_v2, %v995_v2 }
 0x47a   : > { %1001 = vadd.xlane.f32.xlu1 %v998_v3 }
 0x47b   : > { %999 = vadd.xlane.f32.xlu0 %v997_v5 }
 0x507   : > { %v1002_v6 = vpop.xlane.xlu1 %1001 }
 0x508   : > { %v1000_v33 = vpop.xlane.xlu0 %999  ;;  %1004 = vst.msk [vmem:[%s283_s25 + $0x8] sm:$0xff] %vm992_vm8, %v1002_v6 }
 0x509   : > { %1003 = vst.msk [vmem:[%s283_s25] sm:$0xff] %vm992_vm8, %v1000_v33 }
 0x50a PF: > { %s17_s21 = sadd.s32 1, %s1342_s21  }
 0x50b   : > { %p14_p4 = scmp.ge.s32.totalorder %s17_s21, 4  }
 0x50d   :  { %16 = sbr.rel (!%p14_p4) target bundleno = 1 (0x1), region = 90 }

// kernel: cifar_vqvae_forward.16
= control target key start
LH: loop header
LB: loop body
LE: loop exit
PB: predicated region body
PF: predicated region fallthrough
CT: control target
= control target key end

     0   :  { %s554_s12 = smov 0   ;;  %s626_s0 = inlined_call_operand.vmem [shape: bf16[32,256], index: 0, kind: input, shape index: {}]   ;;  %s627_s1 = inlined_call_operand.vmem [shape: bf16[256,128], index: 1, kind: input, shape index: {}]   ;;  %s628_s2 = inlined_call_operand.vmem [shape: f32[1,128], index: 2, kind: input, shape index: {}]   ;;  %s629_s3 = inlined_call_operand.vmem [shape: bf16[32,128], index: 3, kind: output, shape index: {}]  }
   0x1 LB: > { %s436_s13 = sadd.s32 4294967295, %s532_s12   ;;  %p440_p0 = scmp.ge.s32.totalorder %s532_s12, 1  ;;  %s532_s12 = sphi %s554_s12, %s13_s12  }
   0x2   : > { %p139_p1 = scmp.lt.s32.totalorder %s532_s12, 3 }
   0x4   : > { %p140_p2 = pnand %p440_p0, %p139_p1 }
   0x5   : > { %v507_v0 = vld [vmem:[%s627_s1 + $0x40] sm:$0xff] (!%p140_p2)   ;;  %s441_s16 = sshll.u32 (!%p140_p2), %s436_s13, 1  ;;  %v509_v2 = vld [vmem:[%s627_s1 + $0x48] sm:$0xff] (!%p140_p2)   ;;  %v511_v4 = vld [vmem:[%s627_s1 + $0x50] sm:$0xff] (!%p140_p2)  }
   0x6   : > { %143 = sbr.rel (%p140_p2) target bundleno = 264 (0x108), region = 32  ;;  %v508_v1 = vld [vmem:[%s627_s1] sm:$0xff] (!%p140_p2)   ;;  %477 = vmatprep.subr.bf16.mxu0 (!%p140_p2), %v507_v0  ;;  %v510_v3 = vld [vmem:[%s627_s1 + $0x8] sm:$0xff] (!%p140_p2)   ;;  %p165_p3 = scmp.lt.s32.totalorder (!%p140_p2), %s441_s16, 3  ;;  %v512_v5 = vld [vmem:[%s627_s1 + $0x10] sm:$0xff] (!%p140_p2)  }
   0x7   : > { %478 = vmatpush3.bf16.msra.mxu0 (!%p140_p2), %v508_v1  ;;  %v513_v6 = vld [vmem:[%s627_s1 + $0x58] sm:$0xff] (!%p140_p2)   ;;  %v515_v8 = vld [vmem:[%s627_s1 + $0x60] sm:$0xff] (!%p140_p2)   ;;  %v517_v10 = vld [vmem:[%s627_s1 + $0x68] sm:$0xff] (!%p140_p2)  }
   0x8   : > { %479 = vmatprep.subr.bf16.mxu0 (!%p140_p2), %v509_v2  ;;  %v514_v7 = vld [vmem:[%s627_s1 + $0x18] sm:$0xff] (!%p140_p2)   ;;  %v516_v9 = vld [vmem:[%s627_s1 + $0x20] sm:$0xff] (!%p140_p2)   ;;  %v518_v12 = vld [vmem:[%s627_s1 + $0x28] sm:$0xff] (!%p140_p2)  }
   0x9   : > { %v519_v13 = vld [vmem:[%s627_s1 + $0x70] sm:$0xff] (!%p140_p2)   ;;  %v521_v15 = vld [vmem:[%s627_s1 + $0x78] sm:$0xff] (!%p140_p2)   ;;  %v446_v19 = vld [vmem:[%s628_s2] ss:$0 sm:$0xff] (!%p140_p2) }
   0xa   : > { %v520_v14 = vld [vmem:[%s627_s1 + $0x30] sm:$0xff] (!%p140_p2)   ;;  %v522_v16 = vld [vmem:[%s627_s1 + $0x38] sm:$0xff] (!%p140_p2)  }
   0xb   : > { %480 = vmatpush3.bf16.msra.mxu0 (!%p140_p2), %v510_v3 }
   0xc   : > { %481 = vmatprep.subr.bf16.mxu0 (!%p140_p2), %v511_v4 }
   0xd   : > { %s631_s16 = smov (!%p165_p3, %s441_s16), 3 }
   0xe   : > { %s469_s4 = sshll.u32 %s631_s16, 3  ;;  %s445_s28 = sshll.u32 %s631_s16, 2 }
   0xf   : > { %482 = vmatpush3.bf16.msra.mxu0 %v512_v5  ;;  %s169_s9 = scalar_lea.vmem %s626_s0, %s469_s4  ;;  %s175_s4 = scalar_lea.vmem %s629_s3, %s445_s28 }
  0x10   : > { %483 = vmatprep.subr.bf16.mxu0 %v513_v6  ;;  %v525_v11 = vld [vmem:[%s169_s9 + $0x4] ss:$8 sps:$4 sm:$0xff]   ;;  %v523_v17 = vld [vmem:[%s169_s9] ss:$8 sps:$4 sm:$0xff]  }
  0x11   : > { %357 = vmatprep.mubr.bf16.mxu0 %v525_v11 }
  0x13   : > { %484 = vmatpush3.bf16.msra.mxu0 %v514_v7 }
  0x14   : > { %485 = vmatprep.subr.bf16.mxu0 %v515_v8 }
  0x17   : > { %486 = vmatpush3.bf16.msra.mxu0 %v516_v9 }
  0x18   : > { %487 = vmatprep.subr.bf16.mxu0 %v517_v10 }
  0x1b   : > { %488 = vmatpush3.bf16.msra.mxu0 %v518_v12 }
  0x1c   : > { %489 = vmatprep.subr.bf16.mxu0 %v519_v13 }
  0x1f   : > { %490 = vmatpush3.bf16.msra.mxu0 %v520_v14 }
  0x20   : > { %491 = vmatprep.subr.bf16.mxu0 %v521_v15 }
  0x23   : > { %492 = vmatpush3.bf16.msra.mxu0 %v522_v16 }
  0x26   : > { %358 = vmatmul.mubr.bf16.vlgmr.msra.gmra.mrb[0].mxu0 %v523_v17 }
  0xf9   : > { %v493_v18 = vpop.f32.mrb[0].mxu0 }
  0xfa   : > { %v494_v20 = vpop.f32.mrb[1].mxu0 }
  0xfb   : > { %v495_v21 = vadd.f32 %v494_v20, %v493_v18  ;;  %v496_v22 = vpop.f32.mrb[2].mxu0 }
  0xfc   : > { %v497_v23 = vpop.f32.mrb[3].mxu0 }
  0xfd   : > { %v360_v24 = vadd.f32 %v495_v21, %v446_v19  ;;  %v498_v25 = vadd.f32 %v497_v23, %v496_v22 }
  0xff   : > { %v366_v26 = vmul.f32 0.2, %v360_v24  ;;  %v363_v27 = vadd.f32 %v498_v25, %v446_v19 }
 0x101   : > { %v367_v28 = vmul.f32 0.2, %v363_v27  ;;  %v368_v29 = vmax.f32 %v360_v24, %v366_v26 }
 0x103   : > { %v369_v30 = vmax.f32 %v363_v27, %v367_v28 }
 0x105   : > { %v475_v31 = vpack.c.bf16 %v369_v30, %v368_v29 }
 0x107   : > { %476 = vst [vmem:[%s175_s4] sm:$0xff] %v475_v31  }
 0x108 PF: > { %s13_s12 = sadd.s32 1, %s532_s12  }
 0x109   : > { %p10_p4 = scmp.ge.s32.totalorder %s13_s12, 4  }
 0x10b   :  { %12 = sbr.rel (!%p10_p4) target bundleno = 1 (0x1), region = 62 }

// kernel: cifar_vqvae_forward.20
= control target key start
LH: loop header
LB: loop body
LE: loop exit
PB: predicated region body
PF: predicated region fallthrough
CT: control target
= control target key end

     0   :  { %s619_s12 = smov 0   ;;  %s673_s0 = inlined_call_operand.vmem [shape: bf16[128,128], index: 0, kind: input, shape index: {}]   ;;  %s674_s1 = inlined_call_operand.vmem [shape: bf16[128,128], index: 1, kind: input, shape index: {}]   ;;  %s675_s2 = inlined_call_operand.vmem [shape: f32[1,128], index: 2, kind: input, shape index: {}]   ;;  %s676_s3 = inlined_call_operand.vmem [shape: f32[128,128], index: 3, kind: output, shape index: {}]  }
   0x1 LB: > { %s455_s13 = sadd.s32 4294967295, %s597_s12   ;;  %p459_p0 = scmp.ge.s32.totalorder %s597_s12, 1  ;;  %s597_s12 = sphi %s619_s12, %s13_s12  }
   0x2   : > { %p138_p1 = scmp.lt.s32.totalorder %s597_s12, 3 }
   0x4   : > { %p139_p2 = pnand %p459_p0, %p138_p1 }
   0x5   : > { %v547_v0 = vld [vmem:[%s674_s1] sm:$0xff] (!%p139_p2)   ;;  %s460_s16 = sshll.u32 (!%p139_p2), %s455_s13, 3  ;;  %v548_v1 = vld [vmem:[%s674_s1 + $0x8] sm:$0xff] (!%p139_p2)   ;;  %v549_v2 = vld [vmem:[%s674_s1 + $0x10] sm:$0xff] (!%p139_p2)  }
   0x6   : > { %142 = sbr.rel (%p139_p2) target bundleno = 286 (0x11e), region = 32  ;;  %p163_p3 = scmp.lt.s32.totalorder (!%p139_p2), %s460_s16, 15  ;;  %499 = vmatprep.subr.bf16.mxu0 (!%p139_p2), %v547_v0  ;;  %523 = vmatprep.subr.bf16.mxu1 (!%p139_p2), %v547_v0  ;;  %v550_v3 = vld [vmem:[%s674_s1 + $0x18] sm:$0xff] (!%p139_p2)   ;;  %v551_v6 = vld [vmem:[%s674_s1 + $0x20] sm:$0xff] (!%p139_p2)   ;;  %v552_v7 = vld [vmem:[%s674_s1 + $0x28] sm:$0xff] (!%p139_p2)  }
   0x7   : > { %500 = vmatpush3.bf16.msra.mxu0 (!%p139_p2), %v547_v0  ;;  %531 = vmatpush3.bf16.msra.mxu1 (!%p139_p2), %v547_v0  ;;  %v553_v8 = vld [vmem:[%s674_s1 + $0x30] sm:$0xff] (!%p139_p2)   ;;  %v554_v9 = vld [vmem:[%s674_s1 + $0x38] sm:$0xff] (!%p139_p2)   ;;  %v464_v12 = vld [vmem:[%s675_s2] ss:$0 sm:$0xff] (!%p139_p2) }
   0x8   : > { %501 = vmatprep.subr.bf16.mxu0 (!%p139_p2), %v548_v1  ;;  %524 = vmatprep.subr.bf16.mxu1 (!%p139_p2), %v548_v1 }
   0xb   : > { %502 = vmatpush3.bf16.msra.mxu0 (!%p139_p2), %v548_v1  ;;  %532 = vmatpush3.bf16.msra.mxu1 (!%p139_p2), %v548_v1 }
   0xc   : > { %503 = vmatprep.subr.bf16.mxu0 (!%p139_p2), %v549_v2  ;;  %525 = vmatprep.subr.bf16.mxu1 (!%p139_p2), %v549_v2 }
   0xd   : > { %s678_s16 = smov (!%p163_p3, %s460_s16), 15 }
   0xe   : > { %s461_s21 = sshll.u32 %s678_s16, 2  ;;  %s463_s10 = sshll.u32 %s678_s16, 3 }
   0xf   : > { %s642_s24 = scalar_lea.vmem %s673_s0, %s461_s21  ;;  %504 = vmatpush3.bf16.msra.mxu0 %v549_v2  ;;  %533 = vmatpush3.bf16.msra.mxu1 %v549_v2  ;;  %s172_s14 = scalar_lea.vmem %s676_s3, %s463_s10 }
  0x10   : > { %v555_v4 = vld [vmem:[%s642_s24] sm:$0xff]   ;;  %v556_v5 = vld [vmem:[%s642_s24 + $0x10] sm:$0xff]   ;;  %505 = vmatprep.subr.bf16.mxu0 %v550_v3  ;;  %526 = vmatprep.subr.bf16.mxu1 %v550_v3  ;;  %v557_v10 = vld [vmem:[%s642_s24 + $0x8] sm:$0xff]  }
  0x11   : > { %515 = vmatprep.mubr.bf16.mxu0 %v555_v4  ;;  %519 = vmatprep.mubr.bf16.mxu1 %v556_v5  ;;  %v558_v11 = vld [vmem:[%s642_s24 + $0x18] sm:$0xff]  }
  0x13   : > { %506 = vmatpush3.bf16.msra.mxu0 %v550_v3  ;;  %534 = vmatpush3.bf16.msra.mxu1 %v550_v3 }
  0x14   : > { %507 = vmatprep.subr.bf16.mxu0 %v551_v6  ;;  %527 = vmatprep.subr.bf16.mxu1 %v551_v6 }
  0x17   : > { %508 = vmatpush3.bf16.msra.mxu0 %v551_v6  ;;  %535 = vmatpush3.bf16.msra.mxu1 %v551_v6 }
  0x18   : > { %509 = vmatprep.subr.bf16.mxu0 %v552_v7  ;;  %528 = vmatprep.subr.bf16.mxu1 %v552_v7 }
  0x1b   : > { %510 = vmatpush3.bf16.msra.mxu0 %v552_v7  ;;  %536 = vmatpush3.bf16.msra.mxu1 %v552_v7 }
  0x1c   : > { %511 = vmatprep.subr.bf16.mxu0 %v553_v8  ;;  %529 = vmatprep.subr.bf16.mxu1 %v553_v8 }
  0x1f   : > { %512 = vmatpush3.bf16.msra.mxu0 %v553_v8  ;;  %537 = vmatpush3.bf16.msra.mxu1 %v553_v8 }
  0x20   : > { %513 = vmatprep.subr.bf16.mxu0 %v554_v9  ;;  %530 = vmatprep.subr.bf16.mxu1 %v554_v9 }
  0x23   : > { %514 = vmatpush3.bf16.msra.mxu0 %v554_v9  ;;  %538 = vmatpush3.bf16.msra.mxu1 %v554_v9 }
  0x26   : > { %516 = vmatmul.mubr.bf16.vlgmr.msra.gmra.mrb[0].mxu0 %v557_v10  ;;  %520 = vmatmul.mubr.bf16.vlgmr.msra.gmra.mrb[0].mxu1 %v558_v11 }
  0xf9   : > { %v517_v13 = vpop.f32.mrb[0].mxu0  ;;  %v521_v14 = vpop.f32.mrb[0].mxu1 }
  0xfa   : > { %v321_v15 = vadd.f32 %v517_v13, %v464_v12  ;;  %v337_v16 = vadd.f32 %v521_v14, %v464_v12  ;;  %v312_v17 = vpop.f32.mrb[1].mxu0  ;;  %v328_v18 = vpop.f32.mrb[1].mxu1 }
  0xfb   : > { %v313_v19 = vadd.f32 %v464_v12, %v312_v17  ;;  %v329_v20 = vadd.f32 %v464_v12, %v328_v18  ;;  %v518_v21 = vpop.f32.mrb[2].mxu0  ;;  %v522_v22 = vpop.f32.mrb[2].mxu1 }
  0xfc   : > { %v479_v23 = vmul.f32 -1.442695, %v321_v15  ;;  %v483_v24 = vmul.f32 -1.442695, %v337_v16  ;;  %v324_v25 = vadd.f32 %v518_v21, %v464_v12  ;;  %v340_v26 = vadd.f32 %v522_v22, %v464_v12  ;;  %v315_v27 = vpop.f32.mrb[3].mxu0  ;;  %v331_v28 = vpop.f32.mrb[3].mxu1 }
  0xfd   : > { %v477_v29 = vmul.f32 -1.442695, %v313_v19  ;;  %v481_v30 = vmul.f32 -1.442695, %v329_v20  ;;  %v316_v31 = vadd.f32 %v464_v12, %v315_v27  ;;  %v332_v32 = vadd.f32 %v464_v12, %v331_v28 }
  0xfe   : > { %559 = vpow2.f32 %v479_v23  ;;  %v480_v33 = vmul.f32 -1.442695, %v324_v25  ;;  %v484_v34 = vmul.f32 -1.442695, %v340_v26 }
  0xff   : > { %561 = vpow2.f32 %v483_v24  ;;  %v478_v35 = vmul.f32 -1.442695, %v316_v31  ;;  %v482_v36 = vmul.f32 -1.442695, %v332_v32 }
 0x100   : > { %563 = vpow2.f32 %v477_v29 }
 0x101   : > { %565 = vpow2.f32 %v481_v30 }
 0x102   : > { %567 = vpow2.f32 %v480_v33 }
 0x103   : > { %569 = vpow2.f32 %v484_v34 }
 0x104   : > { %571 = vpow2.f32 %v478_v35 }
 0x105   : > { %573 = vpow2.f32 %v482_v36 }
 0x108   : > { %v560_v37 = vpop.eup %559 }
 0x109   : > { %v562_v38 = vpop.eup %561  ;;  %v369_v39 = vadd.f32 1.0, %v560_v37 }
 0x10a   : > { %v564_v40 = vpop.eup %563  ;;  %v373_v41 = vadd.f32 1.0, %v562_v38 }
 0x10b   : > { %v566_v42 = vpop.eup %565  ;;  %575 = vrcp.f32 %v369_v39  ;;  %v367_v43 = vadd.f32 1.0, %v564_v40 }
 0x10c   : > { %v568_v44 = vpop.eup %567  ;;  %577 = vrcp.f32 %v373_v41  ;;  %v371_v45 = vadd.f32 1.0, %v566_v42 }
 0x10d   : > { %v570_v46 = vpop.eup %569  ;;  %579 = vrcp.f32 %v367_v43  ;;  %v370_v47 = vadd.f32 1.0, %v568_v44 }
 0x10e   : > { %v572_v48 = vpop.eup %571  ;;  %581 = vrcp.f32 %v371_v45  ;;  %v374_v49 = vadd.f32 1.0, %v570_v46 }
 0x10f   : > { %v574_v50 = vpop.eup %573  ;;  %583 = vrcp.f32 %v370_v47  ;;  %v368_v51 = vadd.f32 1.0, %v572_v48 }
 0x110   : > { %585 = vrcp.f32 %v374_v49  ;;  %v372_v52 = vadd.f32 1.0, %v574_v50 }
 0x111   : > { %587 = vrcp.f32 %v368_v51 }
 0x112   : > { %589 = vrcp.f32 %v372_v52 }
 0x115   : > { %v576_v53 = vpop.eup %575 }
 0x116   : > { %v578_v54 = vpop.eup %577  ;;  %393 = vst [vmem:[%s172_s14 + $0x10] sm:$0xff] %v576_v53 }
 0x117   : > { %v580_v55 = vpop.eup %579  ;;  %397 = vst [vmem:[%s172_s14 + $0x30] sm:$0xff] %v578_v54 }
 0x118   : > { %v582_v56 = vpop.eup %581  ;;  %391 = vst [vmem:[%s172_s14] sm:$0xff] %v580_v55 }
 0x119   : > { %v584_v57 = vpop.eup %583  ;;  %395 = vst [vmem:[%s172_s14 + $0x20] sm:$0xff] %v582_v56 }
 0x11a   : > { %v586_v58 = vpop.eup %585  ;;  %394 = vst [vmem:[%s172_s14 + $0x18] sm:$0xff] %v584_v57 }
 0x11b   : > { %v588_v59 = vpop.eup %587  ;;  %398 = vst [vmem:[%s172_s14 + $0x38] sm:$0xff] %v586_v58 }
 0x11c   : > { %v590_v60 = vpop.eup %589  ;;  %392 = vst [vmem:[%s172_s14 + $0x8] sm:$0xff] %v588_v59 }
 0x11d   : > { %396 = vst [vmem:[%s172_s14 + $0x28] sm:$0xff] %v590_v60 }
 0x11e PF: > { %s13_s12 = sadd.s32 1, %s597_s12  }
 0x11f   : > { %p10_p4 = scmp.ge.s32.totalorder %s13_s12, 4  }
 0x121   :  { %12 = sbr.rel (!%p10_p4) target bundleno = 1 (0x1), region = 62 }

// kernel: squeeze.2
= control target key start
LH: loop header
LB: loop body
LE: loop exit
PB: predicated region body
PF: predicated region fallthrough
CT: control target
= control target key end

     0   :  { %s146_s0 = inlined_call_operand.vmem [shape: s32[32], index: 0, kind: input, shape index: {}]   ;;  %s147_s1 = inlined_call_operand.hbm [shape: s32[2,4,4], index: 1, kind: output, shape index: {}]  }
   0x1   :  { %v5_v0 = vld [vmem:[%s146_s0] sm:$0x1] }
   0x2   :  { %6 = vst [vmem:[#allocation3] sm:$0x1] %v5_v0 }
   0x3   :  { %2 = vsyncpa [#allocation1], 0  ;;  %s105_s0 = smov 124   ;;  %s106_s8 = smov 116   ;;  %vm8_vm0 = vcmask 31744  }
   0x4   :  { %s107_s9 = smov 120   ;;  %s108_s10 = smov 112  }
   0x5   :  { %s109_s11 = smov 108   ;;  %s110_s12 = smov 104  }
   0x6   :  { %s111_s13 = smov 100   ;;  %s112_s14 = smov [#allocation0]  }
   0x7   :  { %s67_s15 = sshll.u32 %s112_s14, 4  ;;  %s68_s15 = int_to_ptr.vmem [resolvable:$true] %s67_s15 }
   0x8   :  { %s81_s16 = scalar_lea.vmem %s68_s15, 128  ;;  %p86_p1 = scmp.lt.s32.totalorder %s68_s15, %s68_s15 }
   0x9   :  { %v10_v1 = vld [vmem:[#allocation3] sm:$0x1]   ;;  %p82_p0 = scmp.ne.s32.totalorder %s68_s15, %s81_s16  ;;  %p87_p2 = scmp.lt.s32.totalorder %s81_s16, %s81_s16 }
   0xa   :  { %v22_v2 = vld [vmem:[#allocation3] sm:$0x1]   ;;  %11 = vrot.lane.b32.xlu0 %v10_v1, %s105_s0 }
   0xb   :  { %23 = vrot.lane.b32.xlu1 %v22_v2, %s106_s8  ;;  %v16_v3 = vld [vmem:[#allocation3] sm:$0x1]   ;;  %p88_p3 = por %p87_p2, %p86_p1 }
   0xc   :  { %v28_v4 = vld [vmem:[#allocation3] sm:$0x1]  }
   0xd   :  { %v7_v5 = vld [vmem:[#allocation3] sm:$0x1]   ;;  %p89_p4 = pnand %p88_p3, %p82_p0 }
   0xe   :  { %9 = vst.msk [vmem:[#allocation2] sm:$0x1] %vm8_vm0, %v7_v5   ;;  %17 = vrot.lane.b32.xlu0 %v16_v3, %s107_s9  ;;  %v34_v6 = vld [vmem:[#allocation3] sm:$0x1]  }
   0xf   :  { %29 = vrot.lane.b32.xlu1 %v28_v4, %s108_s10  ;;  %v40_v7 = vld [vmem:[#allocation3] sm:$0x1]  }
  0x10   :  { %v46_v8 = vld [vmem:[#allocation3] sm:$0x1]  }
  0x12   :  { %35 = vrot.lane.b32.xlu0 %v34_v6, %s109_s11 }
  0x13   :  { %41 = vrot.lane.b32.xlu1 %v40_v7, %s110_s12 }
  0x16   :  { %47 = vrot.lane.b32.xlu0 %v46_v8, %s111_s13 }
  0x7c   :  { %v12_v9 = vpop.permute.xlu0 %11  }
  0x7d   :  { %v24_v10 = vpop.permute.xlu1 %23   ;;  %15 = vst.msk [vmem:[#allocation2 + $0x1] sm:$0x1] %vm8_vm0, %v12_v9  }
  0x7e   :  { %27 = vst.msk [vmem:[#allocation2 + $0x3] sm:$0x1] %vm8_vm0, %v24_v10  }
  0x80   :  { %v18_v11 = vpop.permute.xlu0 %17  }
  0x81   :  { %v30_v12 = vpop.permute.xlu1 %29   ;;  %21 = vst.msk [vmem:[#allocation2 + $0x2] sm:$0x1] %vm8_vm0, %v18_v11  }
  0x82   :  { %33 = vst.msk [vmem:[#allocation2 + $0x8] sm:$0x1] %vm8_vm0, %v30_v12  }
  0x84   :  { %v36_v13 = vpop.permute.xlu0 %35  }
  0x85   :  { %v42_v14 = vpop.permute.xlu1 %41   ;;  %39 = vst.msk [vmem:[#allocation2 + $0x9] sm:$0x1] %vm8_vm0, %v36_v13  }
  0x86   :  { %45 = vst.msk [vmem:[#allocation2 + $0xa] sm:$0x1] %vm8_vm0, %v42_v14  }
  0x88   :  { %v48_v15 = vpop.permute.xlu0 %47   ;;  %v55_v16 = vld [vmem:[#allocation2] sm:$0xf] }
  0x89   :  { %51 = vst.msk [vmem:[#allocation2 + $0xb] sm:$0x1] %vm8_vm0, %v48_v15   ;;  %57 = vst [vmem:[#allocation0] sm:$0xf] %v55_v16 }
  0x90   :  { %v59_v17 = vld [vmem:[#allocation2 + $0x8] sm:$0xf] }
  0x91   :  { %62 = vst [vmem:[#allocation0 + $0x4] sm:$0xf] %v59_v17 }
  0x92   :  { %92 = shalt.err (!%p89_p4)
}
  0x93   :  { %s93_s19 = scalar_lea.hbm %s147_s1, 128 }
  0x94   :  { %p94_p5 = scmp.ne.s32.totalorder %s147_s1, %s93_s19  ;;  %p97_p6 = scmp.lt.u32.totalorder %s93_s19, %s147_s1 }
  0x96   :  { %p99_p7 = pnand %p97_p6, %p94_p5 }
  0x98   :  { %102 = shalt.err (!%p99_p7)
}
  0x99   :  { %70 = dma.vmem_to_hbm [thread:$0]  %s68_s15, 128, %s147_s1, [#allocation1]  }
  0x9a   :  { %103 = dma.done.wait [#allocation1], 128  }
  0x9b   :  { %104 = vsyncadd [#allocation1], 4294967168 }
  0x9c   :  { %72 = vsyncpa [#allocation1], 1 }

</bundles_post_ra>
